<compile_context>
chip_gen: v6e
topology: v6e:2x2x1
jax: 0.10.0
libtpu: 0.0.40
codegen_flags: <defaults>
</compile_context>

<pallas_src>
import numpy as np
import jax
import jax.numpy as jnp
from jax.experimental import pallas as pl
from jax.experimental.pallas import tpu as pltpu

# ----- SDE / model hyper-parameters (deterministic, in-script) -----
N_STEPS = 8          # sde.N
T_FINAL = 1.0        # sde.T
T_EPS = 1e-5         # t_eps
BETA_MIN = 0.1
BETA_MAX = 20.0
HIDDEN = 32          # model hidden width
TILE_M = 512         # pixels per grid step (lane axis); multiple of 128


def _step_coefficients():
    """Per-step scalar coefficients, precomputed on the host in float64."""
    dt = 1.0 / N_STEPS
    ts = np.linspace(T_EPS, T_FINAL, N_STEPS).astype(np.float64)   # timesteps
    beta = BETA_MIN + ts * (BETA_MAX - BETA_MIN)
    log_mean_coeff = -0.25 * ts * ts * (BETA_MAX - BETA_MIN) - 0.5 * ts * BETA_MIN
    sigma = np.sqrt(-np.expm1(2.0 * log_mean_coeff))   # avoids 1 - exp() cancellation
    a = 1.0 + 0.5 * beta * dt                          #  a_s * x
    c = beta * dt / sigma                              # -c_s * eps
    n = np.sqrt(beta) * np.sqrt(dt)                    # +n_s * z   (noiseless at step 0)
    n[0] = 0.0
    return ts, a, c, n


def _make_sampler_kernel():
    _, a_s, c_s, n_s = _step_coefficients()

    def kernel(xy_ref, z_ref, b1t_ref, w1t_ref, w2t_ref, b2_ref, out_ref):
        # State (2C, TILE_M) lives in registers for the whole unrolled loop.
        xy = xy_ref[...]
        # Loop-invariant weights / biases, loaded once.
        w1t = w1t_ref[...]            # (HIDDEN, F)
        w2t = w2t_ref[...]            # (F, HIDDEN)
        b2 = b2_ref[...]              # (F, 1)
        b1t = b1t_ref[...]            # (N_STEPS, HIDDEN, 1)  = b1 + t_s * bt

        # reversed(range(N)): time_step = N-1, ..., 0 ; fully unrolled.
        for s in reversed(range(N_STEPS)):
            # model: eps(x_t, y_t, t)  in the transposed (feature-major) layout
            h = jnp.dot(w1t, xy, preferred_element_type=jnp.float32)
            h = jnp.maximum(h + b1t[s], 0.0)                            # (HIDDEN, TILE_M)
            eps = jnp.dot(w2t, h, preferred_element_type=jnp.float32) + b2

            # Euler–Maruyama reverse step:
            #   x_prev = (1 + 0.5*beta*dt) * x - (beta*dt/sigma) * eps
            #            + [time_step > 0] * sqrt(beta) * sqrt(dt) * z
            xy = float(a_s[s]) * xy - float(c_s[s]) * eps
            if s > 0:
                xy = xy + float(n_s[s]) * z_ref[s - 1]

        # torch.clip(x_0, -1, 1) / torch.clip(y_0, -1, 1)
        out_ref[...] = jnp.clip(xy, -1.0, 1.0)

    return kernel


def diffusion_sample(x_T, y_T, params, seed=0):
    """Joint reverse-diffusion sampling. Inputs/outputs are NCHW, float32."""
    B, C, H, W = x_T.shape
    M = B * H * W
    F = 2 * C
    w1, b1, bt, w2, b2 = params
    Hh = w1.shape[1]

    # Lane-dense layout: pixels on the lane axis.  NCHW -> (C, B*H*W); stack x|y
    # on the sublane (feature) axis -> (2C, M).
    x_cm = jnp.transpose(x_T, (1, 0, 2, 3)).reshape(C, M)
    y_cm = jnp.transpose(y_T, (1, 0, 2, 3)).reshape(C, M)
    xy = jnp.concatenate([x_cm, y_cm], axis=0).astype(jnp.float32)

    n_tiles = pl.cdiv(M, TILE_M)
    m_pad = n_tiles * TILE_M
    if m_pad != M:
        xy = jnp.pad(xy, ((0, 0), (0, m_pad - M)))

    # Gaussian noise for steps N-1 .. 1 (final step is noiseless), drawn once.
    z = jax.random.normal(jax.random.PRNGKey(seed),
                          (N_STEPS - 1, F, m_pad), jnp.float32)

    # Fused per-step bias  b1 + t_s * bt  ->  (N_STEPS, HIDDEN, 1)
    ts, _, _, _ = _step_coefficients()
    ts_f32 = jnp.asarray(ts, jnp.float32)
    b1t = (b1.reshape(1, Hh) + ts_f32[:, None] * bt.reshape(1, Hh)).reshape(
        N_STEPS, Hh, 1).astype(jnp.float32)

    w1t = jnp.transpose(w1).astype(jnp.float32)   # (HIDDEN, F)
    w2t = jnp.transpose(w2).astype(jnp.float32)   # (F, HIDDEN)
    b2c = b2.reshape(F, 1).astype(jnp.float32)

    out = pl.pallas_call(
        _make_sampler_kernel(),
        out_shape=jax.ShapeDtypeStruct((F, m_pad), jnp.float32),
        grid=(n_tiles,),
        in_specs=[
            pl.BlockSpec((F, TILE_M), lambda i: (0, i)),                    # xy state
            pl.BlockSpec((N_STEPS - 1, F, TILE_M), lambda i: (0, 0, i)),    # noise
            pl.BlockSpec((N_STEPS, Hh, 1), lambda i: (0, 0, 0)),            # b1 + t*bt
            pl.BlockSpec((Hh, F), lambda i: (0, 0)),                        # W1^T
            pl.BlockSpec((F, Hh), lambda i: (0, 0)),                        # W2^T
            pl.BlockSpec((F, 1), lambda i: (0, 0)),                         # b2
        ],
        out_specs=pl.BlockSpec((F, TILE_M), lambda i: (0, i)),
        input_output_aliases={0: 0},          # donate the state buffer
        compiler_params=pltpu.CompilerParams(
            dimension_semantics=("parallel",)),
    )(xy, z, b1t, w1t, w2t, b2c)

    out = out[:, :M]
    x0 = jnp.transpose(out[:C].reshape(C, B, H, W), (1, 0, 2, 3))
    y0 = jnp.transpose(out[C:].reshape(C, B, H, W), (1, 0, 2, 3))
    return x0, y0


def init_params(key, C, hidden=HIDDEN):
    F = 2 * C
    k1, k2, k3 = jax.random.split(key, 3)
    w1 = 0.1 * jax.random.normal(k1, (F, hidden), jnp.float32)
    b1 = jnp.zeros((1, hidden), jnp.float32)
    bt = 0.1 * jax.random.normal(k2, (1, hidden), jnp.float32)
    w2 = 0.1 * jax.random.normal(k3, (hidden, F), jnp.float32)
    b2 = jnp.zeros((1, F), jnp.float32)
    return (w1, b1, bt, w2, b2)


if __name__ == "__main__":
    B, C, H, W = 2, 4, 16, 16
    key = jax.random.PRNGKey(0)
    kx, ky, kp = jax.random.split(key, 3)

    x_T = jax.random.normal(kx, (B, C, H, W), jnp.float32)   # x_T ~ N(0, I)
    y_T = jax.random.normal(ky, (B, C, H, W), jnp.float32)   # y_T ~ N(0, I)
    params = init_params(kp, C)

    x_0, y_0 = diffusion_sample(x_T, y_T, params, seed=0)
    x_0, y_0 = jax.block_until_ready((x_0, y_0))

    assert x_0.shape == (B, C, H, W) and y_0.shape == (B, C, H, W)
    assert bool(jnp.all(jnp.isfinite(x_0))) and bool(jnp.all(jnp.isfinite(y_0)))
    assert float(jnp.max(jnp.abs(x_0))) <= 1.0 + 1e-6
    assert float(jnp.max(jnp.abs(y_0))) <= 1.0 + 1e-6
    print("KERNEL_OK")
</pallas_src>

<mosaic_0001>
module attributes {stable_mosaic.version = 11 : i64} {
  func.func @kernel(%arg0: i32, %arg1: memref<8x512xf32, #tpu.memory_space<vmem>>, %arg2: memref<7x8x512xf32, #tpu.memory_space<vmem>>, %arg3: memref<8x32x1xf32, #tpu.memory_space<vmem>>, %arg4: memref<32x8xf32, #tpu.memory_space<vmem>>, %arg5: memref<8x32xf32, #tpu.memory_space<vmem>>, %arg6: memref<8x1xf32, #tpu.memory_space<vmem>>, %arg7: memref<8x512xf32, #tpu.memory_space<vmem>>) attributes {dimension_semantics = [#tpu.dimension_semantics<parallel>], iteration_bounds = array<i64: 1>, scalar_prefetch = 0 : i64, scratch_operands = 0 : i64, tpu.core_type = #tpu.core_type<tc>, window_params = [{transform_indices = @transform_0, window_bounds = array<i64: 8, 512>}, {transform_indices = @transform_1, window_bounds = array<i64: 7, 8, 512>}, {pipeline_mode = #tpu.pipeline_mode<synchronous>, transform_indices = @transform_2, window_bounds = array<i64: 8, 32, 1>}, {pipeline_mode = #tpu.pipeline_mode<synchronous>, transform_indices = @transform_3, window_bounds = array<i64: 32, 8>}, {pipeline_mode = #tpu.pipeline_mode<synchronous>, transform_indices = @transform_4, window_bounds = array<i64: 8, 32>}, {pipeline_mode = #tpu.pipeline_mode<synchronous>, transform_indices = @transform_5, window_bounds = array<i64: 8, 1>}, {transform_indices = @transform_6, window_bounds = array<i64: 8, 512>}]} {
    %c0 = arith.constant 0 : index
    %c0_0 = arith.constant 0 : index
    %0 = vector.load %arg1[%c0, %c0_0] : memref<8x512xf32, #tpu.memory_space<vmem>>, vector<8x512xf32>
    %c0_1 = arith.constant 0 : index
    %c0_2 = arith.constant 0 : index
    %1 = vector.load %arg4[%c0_1, %c0_2] : memref<32x8xf32, #tpu.memory_space<vmem>>, vector<32x8xf32>
    %c0_3 = arith.constant 0 : index
    %c0_4 = arith.constant 0 : index
    %2 = vector.load %arg5[%c0_3, %c0_4] : memref<8x32xf32, #tpu.memory_space<vmem>>, vector<8x32xf32>
    %c0_5 = arith.constant 0 : index
    %c0_6 = arith.constant 0 : index
    %3 = vector.load %arg6[%c0_5, %c0_6] : memref<8x1xf32, #tpu.memory_space<vmem>>, vector<8x1xf32>
    %c0_7 = arith.constant 0 : index
    %c0_8 = arith.constant 0 : index
    %c0_9 = arith.constant 0 : index
    %4 = vector.load %arg3[%c0_7, %c0_8, %c0_9] : memref<8x32x1xf32, #tpu.memory_space<vmem>>, vector<8x32x1xf32>
    %cst = arith.constant dense<0.000000e+00> : vector<32x512xf32>
    %5 = tpu.matmul %1, %0, %cst {dimension_numbers = #tpu.dot_dimension_numbers<[1], [0], [0], [1], [0, 0, 1, 1], [], []>} : vector<32x8xf32>, vector<8x512xf32>, vector<32x512xf32> -> vector<32x512xf32>
    %6 = vector.extract_strided_slice %4 {offsets = [7, 0, 0], sizes = [1, 32, 1], strides = [1, 1, 1]} : vector<8x32x1xf32> to vector<1x32x1xf32>
    %7 = vector.shape_cast %6 : vector<1x32x1xf32> to vector<32x1xf32>
    %8 = vector.broadcast %7 : vector<32x1xf32> to vector<32x512xf32>
    %9 = arith.addf %5, %8 : vector<32x512xf32>
    %cst_10 = arith.constant 0.000000e+00 : f32
    %10 = vector.broadcast %cst_10 : f32 to vector<32x512xf32>
    %11 = arith.maximumf %9, %10 : vector<32x512xf32>
    %cst_11 = arith.constant dense<0.000000e+00> : vector<8x512xf32>
    %12 = tpu.matmul %2, %11, %cst_11 {dimension_numbers = #tpu.dot_dimension_numbers<[1], [0], [0], [1], [0, 0, 1, 1], [], []>} : vector<8x32xf32>, vector<32x512xf32>, vector<8x512xf32> -> vector<8x512xf32>
    %13 = vector.broadcast %3 : vector<8x1xf32> to vector<8x512xf32>
    %14 = arith.addf %12, %13 : vector<8x512xf32>
    %cst_12 = arith.constant 2.250000e+00 : f32
    %15 = vector.broadcast %cst_12 : f32 to vector<8x512xf32>
    %16 = arith.mulf %15, %0 : vector<8x512xf32>
    %cst_13 = arith.constant 2.50005388 : f32
    %17 = vector.broadcast %cst_13 : f32 to vector<8x512xf32>
    %18 = arith.mulf %17, %14 : vector<8x512xf32>
    %19 = arith.subf %16, %18 : vector<8x512xf32>
    %c6 = arith.constant 6 : index
    %c0_14 = arith.constant 0 : index
    %c0_15 = arith.constant 0 : index
    %20 = vector.load %arg2[%c6, %c0_14, %c0_15] : memref<7x8x512xf32, #tpu.memory_space<vmem>>, vector<1x8x512xf32>
    %21 = vector.shape_cast %20 : vector<1x8x512xf32> to vector<8x512xf32>
    %cst_16 = arith.constant 1.58113885 : f32
    %22 = vector.broadcast %cst_16 : f32 to vector<8x512xf32>
    %23 = arith.mulf %22, %21 : vector<8x512xf32>
    %24 = arith.addf %19, %23 : vector<8x512xf32>
    %cst_17 = arith.constant dense<0.000000e+00> : vector<32x512xf32>
    %25 = tpu.matmul %1, %24, %cst_17 {dimension_numbers = #tpu.dot_dimension_numbers<[1], [0], [0], [1], [0, 0, 1, 1], [], []>} : vector<32x8xf32>, vector<8x512xf32>, vector<32x512xf32> -> vector<32x512xf32>
    %26 = vector.extract_strided_slice %4 {offsets = [6, 0, 0], sizes = [1, 32, 1], strides = [1, 1, 1]} : vector<8x32x1xf32> to vector<1x32x1xf32>
    %27 = vector.shape_cast %26 : vector<1x32x1xf32> to vector<32x1xf32>
    %28 = vector.broadcast %27 : vector<32x1xf32> to vector<32x512xf32>
    %29 = arith.addf %25, %28 : vector<32x512xf32>
    %cst_18 = arith.constant 0.000000e+00 : f32
    %30 = vector.broadcast %cst_18 : f32 to vector<32x512xf32>
    %31 = arith.maximumf %29, %30 : vector<32x512xf32>
    %cst_19 = arith.constant dense<0.000000e+00> : vector<8x512xf32>
    %32 = tpu.matmul %2, %31, %cst_19 {dimension_numbers = #tpu.dot_dimension_numbers<[1], [0], [0], [1], [0, 0, 1, 1], [], []>} : vector<8x32xf32>, vector<32x512xf32>, vector<8x512xf32> -> vector<8x512xf32>
    %33 = vector.broadcast %3 : vector<8x1xf32> to vector<8x512xf32>
    %34 = arith.addf %32, %33 : vector<8x512xf32>
    %cst_20 = arith.constant 2.07232332 : f32
    %35 = vector.broadcast %cst_20 : f32 to vector<8x512xf32>
    %36 = arith.mulf %35, %24 : vector<8x512xf32>
    %cst_21 = arith.constant 2.14530492 : f32
    %37 = vector.broadcast %cst_21 : f32 to vector<8x512xf32>
    %38 = arith.mulf %37, %34 : vector<8x512xf32>
    %39 = arith.subf %36, %38 : vector<8x512xf32>
    %c5 = arith.constant 5 : index
    %c0_22 = arith.constant 0 : index
    %c0_23 = arith.constant 0 : index
    %40 = vector.load %arg2[%c5, %c0_22, %c0_23] : memref<7x8x512xf32, #tpu.memory_space<vmem>>, vector<1x8x512xf32>
    %41 = vector.shape_cast %40 : vector<1x8x512xf32> to vector<8x512xf32>
    %cst_24 = arith.constant 1.46446109 : f32
    %42 = vector.broadcast %cst_24 : f32 to vector<8x512xf32>
    %43 = arith.mulf %42, %41 : vector<8x512xf32>
    %44 = arith.addf %39, %43 : vector<8x512xf32>
    %cst_25 = arith.constant dense<0.000000e+00> : vector<32x512xf32>
    %45 = tpu.matmul %1, %44, %cst_25 {dimension_numbers = #tpu.dot_dimension_numbers<[1], [0], [0], [1], [0, 0, 1, 1], [], []>} : vector<32x8xf32>, vector<8x512xf32>, vector<32x512xf32> -> vector<32x512xf32>
    %46 = vector.extract_strided_slice %4 {offsets = [5, 0, 0], sizes = [1, 32, 1], strides = [1, 1, 1]} : vector<8x32x1xf32> to vector<1x32x1xf32>
    %47 = vector.shape_cast %46 : vector<1x32x1xf32> to vector<32x1xf32>
    %48 = vector.broadcast %47 : vector<32x1xf32> to vector<32x512xf32>
    %49 = arith.addf %45, %48 : vector<32x512xf32>
    %cst_26 = arith.constant 0.000000e+00 : f32
    %50 = vector.broadcast %cst_26 : f32 to vector<32x512xf32>
    %51 = arith.maximumf %49, %50 : vector<32x512xf32>
    %cst_27 = arith.constant dense<0.000000e+00> : vector<8x512xf32>
    %52 = tpu.matmul %2, %51, %cst_27 {dimension_numbers = #tpu.dot_dimension_numbers<[1], [0], [0], [1], [0, 0, 1, 1], [], []>} : vector<8x32xf32>, vector<32x512xf32>, vector<8x512xf32> -> vector<8x512xf32>
    %53 = vector.broadcast %3 : vector<8x1xf32> to vector<8x512xf32>
    %54 = arith.addf %52, %53 : vector<8x512xf32>
    %cst_28 = arith.constant 1.89464641 : f32
    %55 = vector.broadcast %cst_28 : f32 to vector<8x512xf32>
    %56 = arith.mulf %55, %44 : vector<8x512xf32>
    %cst_29 = arith.constant 1.79451442 : f32
    %57 = vector.broadcast %cst_29 : f32 to vector<8x512xf32>
    %58 = arith.mulf %57, %54 : vector<8x512xf32>
    %59 = arith.subf %56, %58 : vector<8x512xf32>
    %c4 = arith.constant 4 : index
    %c0_30 = arith.constant 0 : index
    %c0_31 = arith.constant 0 : index
    %60 = vector.load %arg2[%c4, %c0_30, %c0_31] : memref<7x8x512xf32, #tpu.memory_space<vmem>>, vector<1x8x512xf32>
    %61 = vector.shape_cast %60 : vector<1x8x512xf32> to vector<8x512xf32>
    %cst_32 = arith.constant 1.33764446 : f32
    %62 = vector.broadcast %cst_32 : f32 to vector<8x512xf32>
    %63 = arith.mulf %62, %61 : vector<8x512xf32>
    %64 = arith.addf %59, %63 : vector<8x512xf32>
    %cst_33 = arith.constant dense<0.000000e+00> : vector<32x512xf32>
    %65 = tpu.matmul %1, %64, %cst_33 {dimension_numbers = #tpu.dot_dimension_numbers<[1], [0], [0], [1], [0, 0, 1, 1], [], []>} : vector<32x8xf32>, vector<8x512xf32>, vector<32x512xf32> -> vector<32x512xf32>
    %66 = vector.extract_strided_slice %4 {offsets = [4, 0, 0], sizes = [1, 32, 1], strides = [1, 1, 1]} : vector<8x32x1xf32> to vector<1x32x1xf32>
    %67 = vector.shape_cast %66 : vector<1x32x1xf32> to vector<32x1xf32>
    %68 = vector.broadcast %67 : vector<32x1xf32> to vector<32x512xf32>
    %69 = arith.addf %65, %68 : vector<32x512xf32>
    %cst_34 = arith.constant 0.000000e+00 : f32
    %70 = vector.broadcast %cst_34 : f32 to vector<32x512xf32>
    %71 = arith.maximumf %69, %70 : vector<32x512xf32>
    %cst_35 = arith.constant dense<0.000000e+00> : vector<8x512xf32>
    %72 = tpu.matmul %2, %71, %cst_35 {dimension_numbers = #tpu.dot_dimension_numbers<[1], [0], [0], [1], [0, 0, 1, 1], [], []>} : vector<8x32xf32>, vector<32x512xf32>, vector<8x512xf32> -> vector<8x512xf32>
    %73 = vector.broadcast %3 : vector<8x1xf32> to vector<8x512xf32>
    %74 = arith.addf %72, %73 : vector<8x512xf32>
    %cst_36 = arith.constant 1.71696961 : f32
    %75 = vector.broadcast %cst_36 : f32 to vector<8x512xf32>
    %76 = arith.mulf %75, %64 : vector<8x512xf32>
    %cst_37 = arith.constant 1.46096599 : f32
    %77 = vector.broadcast %cst_37 : f32 to vector<8x512xf32>
    %78 = arith.mulf %77, %74 : vector<8x512xf32>
    %79 = arith.subf %76, %78 : vector<8x512xf32>
    %c3 = arith.constant 3 : index
    %c0_38 = arith.constant 0 : index
    %c0_39 = arith.constant 0 : index
    %80 = vector.load %arg2[%c3, %c0_38, %c0_39] : memref<7x8x512xf32, #tpu.memory_space<vmem>>, vector<1x8x512xf32>
    %81 = vector.shape_cast %80 : vector<1x8x512xf32> to vector<8x512xf32>
    %cst_40 = arith.constant 1.19747198 : f32
    %82 = vector.broadcast %cst_40 : f32 to vector<8x512xf32>
    %83 = arith.mulf %82, %81 : vector<8x512xf32>
    %84 = arith.addf %79, %83 : vector<8x512xf32>
    %cst_41 = arith.constant dense<0.000000e+00> : vector<32x512xf32>
    %85 = tpu.matmul %1, %84, %cst_41 {dimension_numbers = #tpu.dot_dimension_numbers<[1], [0], [0], [1], [0, 0, 1, 1], [], []>} : vector<32x8xf32>, vector<8x512xf32>, vector<32x512xf32> -> vector<32x512xf32>
    %86 = vector.extract_strided_slice %4 {offsets = [3, 0, 0], sizes = [1, 32, 1], strides = [1, 1, 1]} : vector<8x32x1xf32> to vector<1x32x1xf32>
    %87 = vector.shape_cast %86 : vector<1x32x1xf32> to vector<32x1xf32>
    %88 = vector.broadcast %87 : vector<32x1xf32> to vector<32x512xf32>
    %89 = arith.addf %85, %88 : vector<32x512xf32>
    %cst_42 = arith.constant 0.000000e+00 : f32
    %90 = vector.broadcast %cst_42 : f32 to vector<32x512xf32>
    %91 = arith.maximumf %89, %90 : vector<32x512xf32>
    %cst_43 = arith.constant dense<0.000000e+00> : vector<8x512xf32>
    %92 = tpu.matmul %2, %91, %cst_43 {dimension_numbers = #tpu.dot_dimension_numbers<[1], [0], [0], [1], [0, 0, 1, 1], [], []>} : vector<8x32xf32>, vector<32x512xf32>, vector<8x512xf32> -> vector<8x512xf32>
    %93 = vector.broadcast %3 : vector<8x1xf32> to vector<8x512xf32>
    %94 = arith.addf %92, %93 : vector<8x512xf32>
    %cst_44 = arith.constant 1.53929281 : f32
    %95 = vector.broadcast %cst_44 : f32 to vector<8x512xf32>
    %96 = arith.mulf %95, %84 : vector<8x512xf32>
    %cst_45 = arith.constant 1.17268968 : f32
    %97 = vector.broadcast %cst_45 : f32 to vector<8x512xf32>
    %98 = arith.mulf %97, %94 : vector<8x512xf32>
    %99 = arith.subf %96, %98 : vector<8x512xf32>
    %c2 = arith.constant 2 : index
    %c0_46 = arith.constant 0 : index
    %c0_47 = arith.constant 0 : index
    %100 = vector.load %arg2[%c2, %c0_46, %c0_47] : memref<7x8x512xf32, #tpu.memory_space<vmem>>, vector<1x8x512xf32>
    %101 = vector.shape_cast %100 : vector<1x8x512xf32> to vector<8x512xf32>
    %cst_48 = arith.constant 1.03854978 : f32
    %102 = vector.broadcast %cst_48 : f32 to vector<8x512xf32>
    %103 = arith.mulf %102, %101 : vector<8x512xf32>
    %104 = arith.addf %99, %103 : vector<8x512xf32>
    %cst_49 = arith.constant dense<0.000000e+00> : vector<32x512xf32>
    %105 = tpu.matmul %1, %104, %cst_49 {dimension_numbers = #tpu.dot_dimension_numbers<[1], [0], [0], [1], [0, 0, 1, 1], [], []>} : vector<32x8xf32>, vector<8x512xf32>, vector<32x512xf32> -> vector<32x512xf32>
    %106 = vector.extract_strided_slice %4 {offsets = [2, 0, 0], sizes = [1, 32, 1], strides = [1, 1, 1]} : vector<8x32x1xf32> to vector<1x32x1xf32>
    %107 = vector.shape_cast %106 : vector<1x32x1xf32> to vector<32x1xf32>
    %108 = vector.broadcast %107 : vector<32x1xf32> to vector<32x512xf32>
    %109 = arith.addf %105, %108 : vector<32x512xf32>
    %cst_50 = arith.constant 0.000000e+00 : f32
    %110 = vector.broadcast %cst_50 : f32 to vector<32x512xf32>
    %111 = arith.maximumf %109, %110 : vector<32x512xf32>
    %cst_51 = arith.constant dense<0.000000e+00> : vector<8x512xf32>
    %112 = tpu.matmul %2, %111, %cst_51 {dimension_numbers = #tpu.dot_dimension_numbers<[1], [0], [0], [1], [0, 0, 1, 1], [], []>} : vector<8x32xf32>, vector<32x512xf32>, vector<8x512xf32> -> vector<8x512xf32>
    %113 = vector.broadcast %3 : vector<8x1xf32> to vector<8x512xf32>
    %114 = arith.addf %112, %113 : vector<8x512xf32>
    %cst_52 = arith.constant 1.36161602 : f32
    %115 = vector.broadcast %cst_52 : f32 to vector<8x512xf32>
    %116 = arith.mulf %115, %104 : vector<8x512xf32>
    %cst_53 = arith.constant 0.959072589 : f32
    %117 = vector.broadcast %cst_53 : f32 to vector<8x512xf32>
    %118 = arith.mulf %117, %114 : vector<8x512xf32>
    %119 = arith.subf %116, %118 : vector<8x512xf32>
    %c1 = arith.constant 1 : index
    %c0_54 = arith.constant 0 : index
    %c0_55 = arith.constant 0 : index
    %120 = vector.load %arg2[%c1, %c0_54, %c0_55] : memref<7x8x512xf32, #tpu.memory_space<vmem>>, vector<1x8x512xf32>
    %121 = vector.shape_cast %120 : vector<1x8x512xf32> to vector<8x512xf32>
    %cst_56 = arith.constant 0.850430488 : f32
    %122 = vector.broadcast %cst_56 : f32 to vector<8x512xf32>
    %123 = arith.mulf %122, %121 : vector<8x512xf32>
    %124 = arith.addf %119, %123 : vector<8x512xf32>
    %cst_57 = arith.constant dense<0.000000e+00> : vector<32x512xf32>
    %125 = tpu.matmul %1, %124, %cst_57 {dimension_numbers = #tpu.dot_dimension_numbers<[1], [0], [0], [1], [0, 0, 1, 1], [], []>} : vector<32x8xf32>, vector<8x512xf32>, vector<32x512xf32> -> vector<32x512xf32>
    %126 = vector.extract_strided_slice %4 {offsets = [1, 0, 0], sizes = [1, 32, 1], strides = [1, 1, 1]} : vector<8x32x1xf32> to vector<1x32x1xf32>
    %127 = vector.shape_cast %126 : vector<1x32x1xf32> to vector<32x1xf32>
    %128 = vector.broadcast %127 : vector<32x1xf32> to vector<32x512xf32>
    %129 = arith.addf %125, %128 : vector<32x512xf32>
    %cst_58 = arith.constant 0.000000e+00 : f32
    %130 = vector.broadcast %cst_58 : f32 to vector<32x512xf32>
    %131 = arith.maximumf %129, %130 : vector<32x512xf32>
    %cst_59 = arith.constant dense<0.000000e+00> : vector<8x512xf32>
    %132 = tpu.matmul %2, %131, %cst_59 {dimension_numbers = #tpu.dot_dimension_numbers<[1], [0], [0], [1], [0, 0, 1, 1], [], []>} : vector<8x32xf32>, vector<32x512xf32>, vector<8x512xf32> -> vector<8x512xf32>
    %133 = vector.broadcast %3 : vector<8x1xf32> to vector<8x512xf32>
    %134 = arith.addf %132, %133 : vector<8x512xf32>
    %cst_60 = arith.constant 1.18393922 : f32
    %135 = vector.broadcast %cst_60 : f32 to vector<8x512xf32>
    %136 = arith.mulf %135, %124 : vector<8x512xf32>
    %cst_61 = arith.constant 0.832292437 : f32
    %137 = vector.broadcast %cst_61 : f32 to vector<8x512xf32>
    %138 = arith.mulf %137, %134 : vector<8x512xf32>
    %139 = arith.subf %136, %138 : vector<8x512xf32>
    %c0_62 = arith.constant 0 : index
    %c0_63 = arith.constant 0 : index
    %c0_64 = arith.constant 0 : index
    %140 = vector.load %arg2[%c0_62, %c0_63, %c0_64] : memref<7x8x512xf32, #tpu.memory_space<vmem>>, vector<1x8x512xf32>
    %141 = vector.shape_cast %140 : vector<1x8x512xf32> to vector<8x512xf32>
    %cst_65 = arith.constant 0.606529832 : f32
    %142 = vector.broadcast %cst_65 : f32 to vector<8x512xf32>
    %143 = arith.mulf %142, %141 : vector<8x512xf32>
    %144 = arith.addf %139, %143 : vector<8x512xf32>
    %cst_66 = arith.constant dense<0.000000e+00> : vector<32x512xf32>
    %145 = tpu.matmul %1, %144, %cst_66 {dimension_numbers = #tpu.dot_dimension_numbers<[1], [0], [0], [1], [0, 0, 1, 1], [], []>} : vector<32x8xf32>, vector<8x512xf32>, vector<32x512xf32> -> vector<32x512xf32>
    %146 = vector.extract_strided_slice %4 {offsets = [0, 0, 0], sizes = [1, 32, 1], strides = [1, 1, 1]} : vector<8x32x1xf32> to vector<1x32x1xf32>
    %147 = vector.shape_cast %146 : vector<1x32x1xf32> to vector<32x1xf32>
    %148 = vector.broadcast %147 : vector<32x1xf32> to vector<32x512xf32>
    %149 = arith.addf %145, %148 : vector<32x512xf32>
    %cst_67 = arith.constant 0.000000e+00 : f32
    %150 = vector.broadcast %cst_67 : f32 to vector<32x512xf32>
    %151 = arith.maximumf %149, %150 : vector<32x512xf32>
    %cst_68 = arith.constant dense<0.000000e+00> : vector<8x512xf32>
    %152 = tpu.matmul %2, %151, %cst_68 {dimension_numbers = #tpu.dot_dimension_numbers<[1], [0], [0], [1], [0, 0, 1, 1], [], []>} : vector<8x32xf32>, vector<32x512xf32>, vector<8x512xf32> -> vector<8x512xf32>
    %153 = vector.broadcast %3 : vector<8x1xf32> to vector<8x512xf32>
    %154 = arith.addf %152, %153 : vector<8x512xf32>
    %cst_69 = arith.constant 1.00626242 : f32
    %155 = vector.broadcast %cst_69 : f32 to vector<8x512xf32>
    %156 = arith.mulf %155, %144 : vector<8x512xf32>
    %cst_70 = arith.constant 12.518652 : f32
    %157 = vector.broadcast %cst_70 : f32 to vector<8x512xf32>
    %158 = arith.mulf %157, %154 : vector<8x512xf32>
    %159 = arith.subf %156, %158 : vector<8x512xf32>
    %cst_71 = arith.constant -1.000000e+00 : f32
    %cst_72 = arith.constant 1.000000e+00 : f32
    %160 = vector.broadcast %cst_71 : f32 to vector<8x512xf32>
    %161 = arith.maximumf %160, %159 : vector<8x512xf32>
    %162 = vector.broadcast %cst_72 : f32 to vector<8x512xf32>
    %163 = arith.minimumf %162, %161 : vector<8x512xf32>
    %c0_73 = arith.constant 0 : index
    %c0_74 = arith.constant 0 : index
    %164 = vector.load %arg7[%c0_73, %c0_74] : memref<8x512xf32, #tpu.memory_space<vmem>>, vector<8x512xf32>
    tpu.vector_store %arg7[%c0_73, %c0_74], %163 {strides = array<i32>} : memref<8x512xf32, #tpu.memory_space<vmem>>, vector<8x512xf32>,
    return
  }
  func.func @transform_0(%arg0: i32) -> (i32, i32) {
    %c0_i32 = arith.constant 0 : i32
    %c0_i32_0 = arith.constant 0 : i32
    return %c0_i32, %arg0 : i32, i32
  }
  func.func @transform_1(%arg0: i32) -> (i32, i32, i32) {
    %c0_i32 = arith.constant 0 : i32
    %c0_i32_0 = arith.constant 0 : i32
    %c0_i32_1 = arith.constant 0 : i32
    return %c0_i32, %c0_i32_0, %arg0 : i32, i32, i32
  }
  func.func @transform_2(%arg0: i32) -> (i32, i32, i32) {
    %c0_i32 = arith.constant 0 : i32
    %c0_i32_0 = arith.constant 0 : i32
    %c0_i32_1 = arith.constant 0 : i32
    %c0_i32_2 = arith.constant 0 : i32
    return %c0_i32, %c0_i32_0, %c0_i32_1 : i32, i32, i32
  }
  func.func @transform_3(%arg0: i32) -> (i32, i32) {
    %c0_i32 = arith.constant 0 : i32
    %c0_i32_0 = arith.constant 0 : i32
    %c0_i32_1 = arith.constant 0 : i32
    return %c0_i32, %c0_i32_0 : i32, i32
  }
  func.func @transform_4(%arg0: i32) -> (i32, i32) {
    %c0_i32 = arith.constant 0 : i32
    %c0_i32_0 = arith.constant 0 : i32
    %c0_i32_1 = arith.constant 0 : i32
    return %c0_i32, %c0_i32_0 : i32, i32
  }
  func.func @transform_5(%arg0: i32) -> (i32, i32) {
    %c0_i32 = arith.constant 0 : i32
    %c0_i32_0 = arith.constant 0 : i32
    %c0_i32_1 = arith.constant 0 : i32
    return %c0_i32, %c0_i32_0 : i32, i32
  }
  func.func @transform_6(%arg0: i32) -> (i32, i32) {
    %c0_i32 = arith.constant 0 : i32
    %c0_i32_0 = arith.constant 0 : i32
    return %c0_i32, %arg0 : i32, i32
  }
}

</mosaic_0001>

<bundles_post_ra>
// kernel: tpu_custom_call.1
= control target key start
LH: loop header
LB: loop body
LE: loop exit
PB: predicated region body
PF: predicated region fallthrough
CT: control target
= control target key end

     0   :  { %11 = vsyncpa [#allocation3], 0  ;;  %s4004_s0 = inlined_call_operand.hbm [shape: f32[8,512], index: 0, kind: input, shape index: {}, may-alias: {0,6}]   ;;  %s4005_s1 = inlined_call_operand.vmem [shape: f32[7,8,512], index: 1, kind: input, shape index: {}]   ;;  %s4006_s2 = inlined_call_operand.vmem [shape: f32[8,32,1], index: 2, kind: input, shape index: {}]   ;;  %s4007_s3 = inlined_call_operand.vmem [shape: f32[32,8], index: 3, kind: input, shape index: {}]   ;;  %s4008_s4 = inlined_call_operand.vmem [shape: f32[8,32], index: 4, kind: input, shape index: {}]   ;;  %s4009_s5 = inlined_call_operand.vmem [shape: f32[8,1], index: 5, kind: input, shape index: {}]   ;;  %s4010_s6 = inlined_call_operand.hbm [shape: f32[8,512], index: 6, kind: output, shape index: {}, may-alias: {0,6}]  }
   0x1   :  { %12 = vsyncpa [#allocation4], 0  ;;  %s3324_s21 = smov [#allocation2]  }
   0x2   :  { %s19_s22 = sshll.u32 %s3324_s21, 4  ;;  %s20_s22 = int_to_ptr.vmem [resolvable:$true] %s19_s22 }
   0x3   :  { %s3288_s23 = scalar_lea.vmem %s20_s22, 512  ;;  %p3293_p1 = scmp.lt.s32.totalorder %s20_s22, %s20_s22 }
   0x4   :  { %p3289_p0 = scmp.ne.s32.totalorder %s20_s22, %s3288_s23  ;;  %p3294_p2 = scmp.lt.s32.totalorder %s3288_s23, %s3288_s23 }
   0x6   :  { %p3295_p3 = por %p3294_p2, %p3293_p1 }
   0x8   :  { %p3296_p4 = pnand %p3295_p3, %p3289_p0 }
   0xa   :  { %3299 = shalt.err (!%p3296_p4)
}
   0xb   :  { %22 = dma.hbm_to_vmem [thread:$0]  %s4004_s0, 512, %s20_s22, [#allocation3]  }
   0xc   :  { %3320 = dma.done.wait [#allocation3], 512  }
   0xd   :  { %3321 = vsyncadd [#allocation3], 4294966784  ;;  %v3325_v0 = vmov 0.0   ;;  %v3326_v1 = vmov 0   ;;  %v3368_v2 = vld [vmem:[#allocation2 + $0x8] sm:$0xff]  ;;  %v3370_v3 = vld [vmem:[#allocation2 + $0x18] sm:$0xff] }
   0xe   :  { %175 = vmatprep.mubr.f32.mxu0 %v3325_v0  ;;  %264 = vmatprep.mubr.f32.mxu1 %v3325_v0  ;;  %v3372_v4 = vld [vmem:[#allocation2] sm:$0xff]  ;;  %vm98_vm0 = vcmask 64512   ;;  %v3376_v5 = vld [vmem:[#allocation2 + $0x10] sm:$0xff]  ;;  %v77_v7 = vld [vmem:[%s4006_s2 + $0xf8] sm:$0xff]  ;;  %vm310_vm1 = vcmask 261120  }
   0xf   :  { %3273 = vset.pattern.permute.xlu0 %v3326_v1  ;;  %3274 = vset.pattern.permute.xlu1 %v3326_v1  ;;  %v3381_v6 = vld [vmem:[%s4007_s3] sm:$0xff]  ;;  %v75_v8 = vld [vmem:[%s4006_s2 + $0xe8] sm:$0xff]  ;;  %v76_v10 = vld [vmem:[%s4006_s2 + $0xf0] sm:$0xff] }
  0x10   :  { %141 = vmatprep.subr.mxu0 %v3368_v2  ;;  %230 = vmatprep.subr.mxu1 %v3370_v3  ;;  %v3400_v9 = vld [vmem:[%s4007_s3 + $0x8] sm:$0xff]  ;;  %v74_v11 = vld [vmem:[%s4006_s2 + $0xe0] sm:$0xff]  ;;  %v3417_v12 = vld [vmem:[%s4007_s3 + $0x10] sm:$0xff] }
  0x11   :  { %142 = vmatpush1.msra.mxu0 %v3372_v4  ;;  %231 = vmatpush1.msra.mxu1 %v3376_v5  ;;  %v45_v13 = vld [vmem:[%s4009_s5] sm:$0xff]  ;;  %v73_v14 = vld [vmem:[%s4006_s2 + $0xd8] sm:$0xff]  ;;  %v72_v16 = vld [vmem:[%s4006_s2 + $0xd0] sm:$0xff] }
  0x12   :  { %3161 = vmatmul.mubr.msk.f32.vlgmr.msra.gmra.mxu0 %vm98_vm0, %v3381_v6  ;;  %3165 = vmatmul.mubr.msk.f32.vlgmr.msra.gmra.mxu1 %vm98_vm0, %v3381_v6  ;;  %v3434_v15 = vld [vmem:[%s4007_s3 + $0x18] sm:$0xff]  ;;  %v71_v17 = vld [vmem:[%s4006_s2 + $0xc8] sm:$0xff]  ;;  %v70_v18 = vld [vmem:[%s4006_s2 + $0xc0] sm:$0xff] }
  0x13   :  { %181 = vmatprep.mubr.f32.mxu0 %v3325_v0  ;;  %270 = vmatprep.mubr.f32.mxu1 %v3325_v0  ;;  %v69_v19 = vld [vmem:[%s4006_s2 + $0xb8] sm:$0xff]  ;;  %v68_v20 = vld [vmem:[%s4006_s2 + $0xb0] sm:$0xff]  ;;  %v67_v21 = vld [vmem:[%s4006_s2 + $0xa8] sm:$0xff] }
  0x14   :  { %95 = vperm.xlu0 %3273, %v77_v7   ;;  %85 = vperm.xlu1 %3274, %v75_v8   ;;  %v66_v22 = vld [vmem:[%s4006_s2 + $0xa0] sm:$0xff]  ;;  %v65_v23 = vld [vmem:[%s4006_s2 + $0x98] sm:$0xff]  ;;  %v64_v24 = vld [vmem:[%s4006_s2 + $0x90] sm:$0xff] }
  0x15   :  { %v63_v25 = vld [vmem:[%s4006_s2 + $0x88] sm:$0xff]  ;;  %v62_v26 = vld [vmem:[%s4006_s2 + $0x80] sm:$0xff]  ;;  %v61_v27 = vld [vmem:[%s4006_s2 + $0x78] sm:$0xff] }
  0x16   :  { %3162 = vmatmul.mubr.msk.f32.gmra.mxu0 %vm98_vm0, %v3400_v9  ;;  %3166 = vmatmul.mubr.msk.f32.gmra.mxu1 %vm98_vm0, %v3400_v9  ;;  %v60_v28 = vld [vmem:[%s4006_s2 + $0x70] sm:$0xff]  ;;  %v59_v29 = vld [vmem:[%s4006_s2 + $0x68] sm:$0xff]  ;;  %v58_v30 = vld [vmem:[%s4006_s2 + $0x60] sm:$0xff] }
  0x17   :  { %187 = vmatprep.mubr.f32.mxu0 %v3325_v0  ;;  %276 = vmatprep.mubr.f32.mxu1 %v3325_v0  ;;  %v57_v31 = vld [vmem:[%s4006_s2 + $0x58] sm:$0xff]  ;;  %v56_v32 = vld [vmem:[%s4006_s2 + $0x50] sm:$0xff]  ;;  %v55_v33 = vld [vmem:[%s4006_s2 + $0x48] sm:$0xff] }
  0x18   :  { %90 = vperm.xlu0 %3273, %v76_v10   ;;  %80 = vperm.xlu1 %3274, %v74_v11   ;;  %v54_v34 = vld [vmem:[%s4006_s2 + $0x40] sm:$0xff]  ;;  %v53_v35 = vld [vmem:[%s4006_s2 + $0x38] sm:$0xff]  ;;  %v52_v36 = vld [vmem:[%s4006_s2 + $0x30] sm:$0xff] }
  0x19   :  { %v51_v37 = vld [vmem:[%s4006_s2 + $0x28] sm:$0xff]  ;;  %v50_v38 = vld [vmem:[%s4006_s2 + $0x20] sm:$0xff]  ;;  %v49_v39 = vld [vmem:[%s4006_s2 + $0x18] sm:$0xff] }
  0x1a   :  { %3163 = vmatmul.mubr.msk.f32.gmra.mxu0 %vm98_vm0, %v3417_v12  ;;  %3167 = vmatmul.mubr.msk.f32.gmra.mxu1 %vm98_vm0, %v3417_v12  ;;  %v48_v40 = vld [vmem:[%s4006_s2 + $0x10] sm:$0xff]  ;;  %v47_v41 = vld [vmem:[%s4006_s2 + $0x8] sm:$0xff]  ;;  %v46_v42 = vld [vmem:[%s4006_s2] sm:$0xff] }
  0x1b   :  { %193 = vmatprep.mubr.f32.mxu0 %v3325_v0  ;;  %282 = vmatprep.mubr.f32.mxu1 %v3325_v0 }
  0x1c   :  { %307 = vperm.xlu0 %3273, %v45_v13   ;;  %498 = vperm.xlu1 %3274, %v73_v14  }
  0x1e   :  { %3164 = vmatmul.mubr.msk.f32.gmra.mxu0 %vm98_vm0, %v3434_v15  ;;  %3168 = vmatmul.mubr.msk.f32.gmra.mxu1 %vm98_vm0, %v3434_v15 }
  0x1f   :  { %378 = vmatprep.mubr.f32.mxu0 %v3325_v0  ;;  %449 = vmatprep.mubr.f32.mxu1 %v3325_v0 }
  0x20   :  { %493 = vperm.xlu0 %3273, %v72_v16   ;;  %488 = vperm.xlu1 %3274, %v71_v17  }
  0x24   :  { %483 = vperm.xlu0 %3273, %v70_v18   ;;  %879 = vperm.xlu1 %3274, %v69_v19  }
  0x28   :  { %874 = vperm.xlu0 %3273, %v68_v20   ;;  %869 = vperm.xlu1 %3274, %v67_v21  }
  0x2c   :  { %864 = vperm.xlu0 %3273, %v66_v22   ;;  %1260 = vperm.xlu1 %3274, %v65_v23  }
  0x30   :  { %1255 = vperm.xlu0 %3273, %v64_v24   ;;  %1250 = vperm.xlu1 %3274, %v63_v25  }
  0x34   :  { %1245 = vperm.xlu0 %3273, %v62_v26   ;;  %1641 = vperm.xlu1 %3274, %v61_v27  }
  0x38   :  { %1636 = vperm.xlu0 %3273, %v60_v28   ;;  %1631 = vperm.xlu1 %3274, %v59_v29  }
  0x3c   :  { %1626 = vperm.xlu0 %3273, %v58_v30   ;;  %2022 = vperm.xlu1 %3274, %v57_v31  }
  0x40   :  { %2017 = vperm.xlu0 %3273, %v56_v32   ;;  %2012 = vperm.xlu1 %3274, %v55_v33  }
  0x44   :  { %2007 = vperm.xlu0 %3273, %v54_v34   ;;  %2403 = vperm.xlu1 %3274, %v53_v35  }
  0x48   :  { %2398 = vperm.xlu0 %3273, %v52_v36   ;;  %2393 = vperm.xlu1 %3274, %v51_v37  }
  0x4c   :  { %2388 = vperm.xlu0 %3273, %v50_v38   ;;  %2783 = vperm.xlu1 %3274, %v49_v39  }
  0x50   :  { %2778 = vperm.xlu0 %3273, %v48_v40   ;;  %2773 = vperm.xlu1 %3274, %v47_v41   ;;  %v3526_v40 = vld [vmem:[%s4008_s4] sm:$0xff] }
  0x54   :  { %2768 = vperm.xlu0 %3273, %v46_v42  }
  0x8f   :  { %v96_v51 = vpop.permute.xlu0 %95  ;;  %v86_v56 = vpop.permute.xlu1 %85 }
  0x93   :  { %v91_v59 = vpop.permute.xlu0 %90  ;;  %v81_v19 = vpop.permute.xlu1 %80 }
  0x97   :  { %v3534_v41 = vpop.permute.xlu0 %307 }
  0xd2   :  { %v177_v43 = vpop.f32.mrf.mxu0  ;;  %v266_v44 = vpop.f32.mrf.mxu1 }
  0xd3   :  { %v178_v28 = vadd.f32 %v177_v43, %v81_v19  ;;  %v267_v29 = vadd.f32 %v266_v44, %v81_v19 }
  0xd4   :  { %v179_v45 = vpop.f32.mrf.mxu0  ;;  %v268_v46 = vpop.f32.mrf.mxu1 }
  0xd5   :  { %v180_v24 = vadd.f32 %v179_v45, %v81_v19  ;;  %v269_v25 = vadd.f32 %v268_v46, %v81_v19  ;;  %v289_v38 = vmax.f32 %v178_v28, 0.0  ;;  %v291_v39 = vmax.f32 %v267_v29, 0.0  ;;  %v3172_v46 = vld [vmem:[%s4005_s1 + $0xc8] sm:$0xff]  ;;  %v494_v28 = vpop.permute.xlu0 %493 }
  0xd6   :  { %v183_v47 = vpop.f32.mrf.mxu0  ;;  %v272_v48 = vpop.f32.mrf.mxu1 }
  0xd7   :  { %v184_v20 = vadd.f32 %v183_v47, %v86_v56  ;;  %v273_v21 = vadd.f32 %v272_v48, %v86_v56  ;;  %v290_v36 = vmax.f32 %v180_v24, 0.0  ;;  %v292_v37 = vmax.f32 %v269_v25, 0.0  ;;  %v499_v25 = vpop.permute.xlu1 %498 }
  0xd8   :  { %v185_v49 = vpop.f32.mrf.mxu0  ;;  %v274_v50 = vpop.f32.mrf.mxu1  ;;  %v457_v47 = vmul.f32 2.25, %v3368_v2  ;;  %v459_v48 = vmul.f32 2.25, %v3370_v3  ;;  %v3173_v2 = vld [vmem:[%s4005_s1 + $0xd0] sm:$0xff] }
  0xd9   :  { %v186_v14 = vadd.f32 %v185_v49, %v86_v56  ;;  %v275_v16 = vadd.f32 %v274_v50, %v86_v56  ;;  %v293_v34 = vmax.f32 %v184_v20, 0.0  ;;  %v295_v35 = vmax.f32 %v273_v21, 0.0 }
  0xda   :  { %v189_v52 = vpop.f32.mrf.mxu0  ;;  %v278_v53 = vpop.f32.mrf.mxu1  ;;  %v456_v49 = vmul.f32 2.25, %v3372_v4  ;;  %v458_v50 = vmul.f32 2.25, %v3376_v5  ;;  %v474_v5 = vmul.f32 1.5811388, %v3172_v46 }
  0xdb   :  { %v190_v11 = vadd.f32 %v189_v52, %v91_v59  ;;  %v279_v13 = vadd.f32 %v278_v53, %v91_v59  ;;  %v294_v32 = vmax.f32 %v186_v14, 0.0  ;;  %v296_v33 = vmax.f32 %v275_v16, 0.0  ;;  %v3174_v53 = vld [vmem:[%s4005_s1 + $0xd8] sm:$0xff] }
  0xdc   :  { %v191_v54 = vpop.f32.mrf.mxu0  ;;  %v280_v55 = vpop.f32.mrf.mxu1 }
  0xdd   :  { %v192_v1 = vadd.f32 %v191_v54, %v91_v59  ;;  %v281_v7 = vadd.f32 %v280_v55, %v91_v59  ;;  %v297_v30 = vmax.f32 %v190_v11, 0.0  ;;  %v299_v31 = vmax.f32 %v279_v13, 0.0  ;;  %v3171_v55 = vld [vmem:[%s4005_s1 + $0xc0] sm:$0xff] }
  0xde   :  { %v195_v57 = vpop.f32.mrf.mxu0  ;;  %v284_v58 = vpop.f32.mrf.mxu1  ;;  %v476_v59 = vmul.f32 1.5811388, %v3174_v53 }
  0xdf   :  { %v196_v60 = vadd.f32 %v195_v57, %v96_v51  ;;  %v285_v61 = vadd.f32 %v284_v58, %v96_v51  ;;  %v298_v26 = vmax.f32 %v192_v1, 0.0  ;;  %v300_v27 = vmax.f32 %v281_v7, 0.0 }
  0xe0   :  { %v197_v62 = vpop.f32.mrf.mxu0  ;;  %v286_v63 = vpop.f32.mrf.mxu1 }
  0xe1   :  { %v198_v8 = vadd.f32 %v197_v62, %v96_v51  ;;  %v287_v10 = vadd.f32 %v286_v63, %v96_v51  ;;  %v301_v22 = vmax.f32 %v196_v60, 0.0  ;;  %v303_v23 = vmax.f32 %v285_v61, 0.0 }
  0xe2   :  { %v473_v61 = vmul.f32 1.5811388, %v3171_v55  ;;  %v475_v63 = vmul.f32 1.5811388, %v3173_v2 }
  0xe3   :  { %v302_v17 = vmax.f32 %v198_v8, 0.0  ;;  %v304_v18 = vmax.f32 %v287_v10, 0.0 }
  0xe5   :  { %338 = vmatprep.subr.mxu0 %v302_v17  ;;  %409 = vmatprep.subr.mxu1 %v304_v18 }
  0xe6   :  { %339 = vmatpush1.msra.mxu0 %v301_v22  ;;  %410 = vmatpush1.msra.mxu1 %v303_v23 }
  0xe7   :  { %340 = vmatprep.subr.mxu0 %v298_v26  ;;  %411 = vmatprep.subr.mxu1 %v300_v27 }
  0xe8   :  { %341 = vmatpush1.msra.mxu0 %v297_v30  ;;  %412 = vmatpush1.msra.mxu1 %v299_v31 }
  0xe9   :  { %342 = vmatprep.subr.mxu0 %v294_v32  ;;  %413 = vmatprep.subr.mxu1 %v296_v33 }
  0xea   :  { %343 = vmatpush1.msra.mxu0 %v293_v34  ;;  %414 = vmatpush1.msra.mxu1 %v295_v35 }
  0xeb   :  { %344 = vmatprep.subr.mxu0 %v290_v36  ;;  %415 = vmatprep.subr.mxu1 %v292_v37 }
  0xec   :  { %345 = vmatpush1.msra.mxu0 %v289_v38  ;;  %416 = vmatpush1.msra.mxu1 %v291_v39  ;;  %v489_v39 = vpop.permute.xlu1 %488 }
  0xed   :  { %3169 = vmatmul.mubr.msk.f32.vlgmr.msra.gmra.mxu0 %vm310_vm1, %v3526_v40  ;;  %3170 = vmatmul.mubr.msk.f32.vlgmr.msra.gmra.mxu1 %vm310_vm1, %v3526_v40 }
  0xee   :  { %565 = vmatprep.mubr.f32.mxu0 %v3325_v0  ;;  %654 = vmatprep.mubr.f32.mxu1 %v3325_v0 }
 0x1ad   :  { %v380_v42 = vpop.f32.mrf.mxu0  ;;  %v451_v43 = vpop.f32.mrf.mxu1 }
 0x1ae   :  { %v381_v44 = vadd.f32 %v380_v42, %v3534_v41  ;;  %v452_v45 = vadd.f32 %v451_v43, %v3534_v41 }
 0x1af   :  { %v382_v51 = vpop.f32.mrf.mxu0  ;;  %v453_v52 = vpop.f32.mrf.mxu1 }
 0x1b0   :  { %v460_v54 = vmul.f32 2.500054, %v381_v44  ;;  %v462_v56 = vmul.f32 2.500054, %v452_v45  ;;  %v383_v3 = vadd.f32 %v382_v51, %v3534_v41  ;;  %v454_v4 = vadd.f32 %v453_v52, %v3534_v41 }
 0x1b2   :  { %v461_v57 = vmul.f32 2.500054, %v383_v3  ;;  %v463_v58 = vmul.f32 2.500054, %v454_v4  ;;  %v464_v60 = vsub.f32 %v456_v49, %v460_v54  ;;  %v466_v62 = vsub.f32 %v458_v50, %v462_v56 }
 0x1b4   :  { %v465_v1 = vsub.f32 %v457_v47, %v461_v57  ;;  %v467_v7 = vsub.f32 %v459_v48, %v463_v58  ;;  %v3560_v11 = vadd.f32 %v473_v61, %v464_v60  ;;  %v3562_v13 = vadd.f32 %v475_v63, %v466_v62  ;;  %v484_v48 = vpop.permute.xlu0 %483 }
 0x1b6   :  { %v3556_v8 = vadd.f32 %v474_v5, %v465_v1  ;;  %v3558_v10 = vadd.f32 %v476_v59, %v467_v7 }
 0x1b8   :  { %531 = vmatprep.subr.mxu0 %v3556_v8  ;;  %620 = vmatprep.subr.mxu1 %v3558_v10 }
 0x1b9   :  { %532 = vmatpush1.msra.mxu0 %v3560_v11  ;;  %621 = vmatpush1.msra.mxu1 %v3562_v13 }
 0x1ba   :  { %3175 = vmatmul.mubr.msk.f32.vlgmr.msra.gmra.mxu0 %vm98_vm0, %v3381_v6  ;;  %3179 = vmatmul.mubr.msk.f32.vlgmr.msra.gmra.mxu1 %vm98_vm0, %v3381_v6 }
 0x1bb   :  { %571 = vmatprep.mubr.f32.mxu0 %v3325_v0  ;;  %660 = vmatprep.mubr.f32.mxu1 %v3325_v0 }
 0x1be   :  { %3176 = vmatmul.mubr.msk.f32.gmra.mxu0 %vm98_vm0, %v3400_v9  ;;  %3180 = vmatmul.mubr.msk.f32.gmra.mxu1 %vm98_vm0, %v3400_v9 }
 0x1bf   :  { %577 = vmatprep.mubr.f32.mxu0 %v3325_v0  ;;  %666 = vmatprep.mubr.f32.mxu1 %v3325_v0 }
 0x1c2   :  { %3177 = vmatmul.mubr.msk.f32.gmra.mxu0 %vm98_vm0, %v3417_v12  ;;  %3181 = vmatmul.mubr.msk.f32.gmra.mxu1 %vm98_vm0, %v3417_v12 }
 0x1c3   :  { %583 = vmatprep.mubr.f32.mxu0 %v3325_v0  ;;  %672 = vmatprep.mubr.f32.mxu1 %v3325_v0 }
 0x1c6   :  { %3178 = vmatmul.mubr.msk.f32.gmra.mxu0 %vm98_vm0, %v3434_v15  ;;  %3182 = vmatmul.mubr.msk.f32.gmra.mxu1 %vm98_vm0, %v3434_v15 }
 0x1c7   :  { %759 = vmatprep.mubr.f32.mxu0 %v3325_v0  ;;  %830 = vmatprep.mubr.f32.mxu1 %v3325_v0 }
 0x27a   :  { %v567_v14 = vpop.f32.mrf.mxu0  ;;  %v656_v16 = vpop.f32.mrf.mxu1 }
 0x27b   :  { %v568_v2 = vadd.f32 %v567_v14, %v484_v48  ;;  %v657_v3 = vadd.f32 %v656_v16, %v484_v48 }
 0x27c   :  { %v569_v17 = vpop.f32.mrf.mxu0  ;;  %v658_v18 = vpop.f32.mrf.mxu1 }
 0x27d   :  { %v570_v53 = vadd.f32 %v569_v17, %v484_v48  ;;  %v659_v54 = vadd.f32 %v658_v18, %v484_v48  ;;  %v679_v63 = vmax.f32 %v568_v2, 0.0  ;;  %v681_v1 = vmax.f32 %v657_v3, 0.0  ;;  %v3186_v18 = vld [vmem:[%s4005_s1 + $0xa8] sm:$0xff]  ;;  %v875_v2 = vpop.permute.xlu0 %874 }
 0x27e   :  { %v573_v19 = vpop.f32.mrf.mxu0  ;;  %v662_v20 = vpop.f32.mrf.mxu1 }
 0x27f   :  { %v574_v49 = vadd.f32 %v573_v19, %v489_v39  ;;  %v663_v50 = vadd.f32 %v662_v20, %v489_v39  ;;  %v680_v61 = vmax.f32 %v570_v53, 0.0  ;;  %v682_v62 = vmax.f32 %v659_v54, 0.0  ;;  %v880_v54 = vpop.permute.xlu1 %879 }
 0x280   :  { %v575_v21 = vpop.f32.mrf.mxu0  ;;  %v664_v22 = vpop.f32.mrf.mxu1  ;;  %v837_v19 = vmul.f32 2.0723233, %v3560_v11  ;;  %v839_v20 = vmul.f32 2.0723233, %v3562_v13 }
 0x281   :  { %v576_v44 = vadd.f32 %v575_v21, %v489_v39  ;;  %v665_v45 = vadd.f32 %v664_v22, %v489_v39  ;;  %v683_v59 = vmax.f32 %v574_v49, 0.0  ;;  %v685_v60 = vmax.f32 %v663_v50, 0.0 }
 0x282   :  { %v579_v23 = vpop.f32.mrf.mxu0  ;;  %v668_v24 = vpop.f32.mrf.mxu1 }
 0x283   :  { %v580_v42 = vadd.f32 %v579_v23, %v494_v28  ;;  %v669_v43 = vadd.f32 %v668_v24, %v494_v28  ;;  %v684_v57 = vmax.f32 %v576_v44, 0.0  ;;  %v686_v58 = vmax.f32 %v665_v45, 0.0  ;;  %v3188_v23 = vld [vmem:[%s4005_s1 + $0xb8] sm:$0xff] }
 0x284   :  { %v581_v26 = vpop.f32.mrf.mxu0  ;;  %v670_v27 = vpop.f32.mrf.mxu1 }
 0x285   :  { %v582_v35 = vadd.f32 %v581_v26, %v494_v28  ;;  %v671_v36 = vadd.f32 %v670_v27, %v494_v28  ;;  %v687_v4 = vmax.f32 %v580_v42, 0.0  ;;  %v689_v5 = vmax.f32 %v669_v43, 0.0  ;;  %v3187_v27 = vld [vmem:[%s4005_s1 + $0xb0] sm:$0xff] }
 0x286   :  { %v585_v29 = vpop.f32.mrf.mxu0  ;;  %v674_v30 = vpop.f32.mrf.mxu1  ;;  %v838_v28 = vmul.f32 2.0723233, %v3556_v8 }
 0x287   :  { %v586_v31 = vadd.f32 %v585_v29, %v499_v25  ;;  %v675_v32 = vadd.f32 %v674_v30, %v499_v25  ;;  %v688_v55 = vmax.f32 %v582_v35, 0.0  ;;  %v690_v56 = vmax.f32 %v671_v36, 0.0 }
 0x288   :  { %v587_v33 = vpop.f32.mrf.mxu0  ;;  %v676_v34 = vpop.f32.mrf.mxu1  ;;  %v840_v29 = vmul.f32 2.0723233, %v3558_v10  ;;  %v855_v30 = vmul.f32 1.4644611, %v3186_v18 }
 0x289   :  { %v588_v37 = vadd.f32 %v587_v33, %v499_v25  ;;  %v677_v38 = vadd.f32 %v676_v34, %v499_v25  ;;  %v691_v51 = vmax.f32 %v586_v31, 0.0  ;;  %v693_v52 = vmax.f32 %v675_v32, 0.0  ;;  %v3185_v25 = vld [vmem:[%s4005_s1 + $0xa0] sm:$0xff] }
 0x28a   :  { %v857_v33 = vmul.f32 1.4644611, %v3188_v23  ;;  %v854_v35 = vmul.f32 1.4644611, %v3185_v25 }
 0x28b   :  { %v692_v46 = vmax.f32 %v588_v37, 0.0  ;;  %v694_v47 = vmax.f32 %v677_v38, 0.0  ;;  %v856_v37 = vmul.f32 1.4644611, %v3187_v27 }
 0x28d   :  { %719 = vmatprep.subr.mxu0 %v692_v46  ;;  %790 = vmatprep.subr.mxu1 %v694_v47 }
 0x28e   :  { %720 = vmatpush1.msra.mxu0 %v691_v51  ;;  %791 = vmatpush1.msra.mxu1 %v693_v52 }
 0x28f   :  { %721 = vmatprep.subr.mxu0 %v688_v55  ;;  %792 = vmatprep.subr.mxu1 %v690_v56 }
 0x290   :  { %722 = vmatpush1.msra.mxu0 %v687_v4  ;;  %793 = vmatpush1.msra.mxu1 %v689_v5 }
 0x291   :  { %723 = vmatprep.subr.mxu0 %v684_v57  ;;  %794 = vmatprep.subr.mxu1 %v686_v58 }
 0x292   :  { %724 = vmatpush1.msra.mxu0 %v683_v59  ;;  %795 = vmatpush1.msra.mxu1 %v685_v60 }
 0x293   :  { %725 = vmatprep.subr.mxu0 %v680_v61  ;;  %796 = vmatprep.subr.mxu1 %v682_v62 }
 0x294   :  { %726 = vmatpush1.msra.mxu0 %v679_v63  ;;  %797 = vmatpush1.msra.mxu1 %v681_v1  ;;  %v870_v1 = vpop.permute.xlu1 %869 }
 0x295   :  { %3183 = vmatmul.mubr.msk.f32.vlgmr.msra.gmra.mxu0 %vm310_vm1, %v3526_v40  ;;  %3184 = vmatmul.mubr.msk.f32.vlgmr.msra.gmra.mxu1 %vm310_vm1, %v3526_v40 }
 0x296   :  { %946 = vmatprep.mubr.f32.mxu0 %v3325_v0  ;;  %1035 = vmatprep.mubr.f32.mxu1 %v3325_v0 }
 0x355   :  { %v761_v7 = vpop.f32.mrf.mxu0  ;;  %v832_v14 = vpop.f32.mrf.mxu1 }
 0x356   :  { %v762_v16 = vadd.f32 %v761_v7, %v3534_v41  ;;  %v833_v17 = vadd.f32 %v832_v14, %v3534_v41 }
 0x357   :  { %v763_v21 = vpop.f32.mrf.mxu0  ;;  %v834_v22 = vpop.f32.mrf.mxu1 }
 0x358   :  { %v841_v24 = vmul.f32 2.145305, %v762_v16  ;;  %v843_v26 = vmul.f32 2.145305, %v833_v17  ;;  %v764_v11 = vadd.f32 %v763_v21, %v3534_v41  ;;  %v835_v13 = vadd.f32 %v834_v22, %v3534_v41 }
 0x35a   :  { %v842_v31 = vmul.f32 2.145305, %v764_v11  ;;  %v844_v32 = vmul.f32 2.145305, %v835_v13  ;;  %v845_v34 = vsub.f32 %v837_v19, %v841_v24  ;;  %v847_v36 = vsub.f32 %v839_v20, %v843_v26  ;;  %v865_v20 = vpop.permute.xlu0 %864 }
 0x35c   :  { %v846_v38 = vsub.f32 %v838_v28, %v842_v31  ;;  %v848_v39 = vsub.f32 %v840_v29, %v844_v32  ;;  %v3622_v44 = vadd.f32 %v854_v35, %v845_v34  ;;  %v3624_v45 = vadd.f32 %v856_v37, %v847_v36 }
 0x35e   :  { %v3618_v42 = vadd.f32 %v855_v30, %v846_v38  ;;  %v3620_v43 = vadd.f32 %v857_v33, %v848_v39 }
 0x360   :  { %912 = vmatprep.subr.mxu0 %v3618_v42  ;;  %1001 = vmatprep.subr.mxu1 %v3620_v43 }
 0x361   :  { %913 = vmatpush1.msra.mxu0 %v3622_v44  ;;  %1002 = vmatpush1.msra.mxu1 %v3624_v45 }
 0x362   :  { %3189 = vmatmul.mubr.msk.f32.vlgmr.msra.gmra.mxu0 %vm98_vm0, %v3381_v6  ;;  %3193 = vmatmul.mubr.msk.f32.vlgmr.msra.gmra.mxu1 %vm98_vm0, %v3381_v6 }
 0x363   :  { %952 = vmatprep.mubr.f32.mxu0 %v3325_v0  ;;  %1041 = vmatprep.mubr.f32.mxu1 %v3325_v0 }
 0x366   :  { %3190 = vmatmul.mubr.msk.f32.gmra.mxu0 %vm98_vm0, %v3400_v9  ;;  %3194 = vmatmul.mubr.msk.f32.gmra.mxu1 %vm98_vm0, %v3400_v9 }
 0x367   :  { %958 = vmatprep.mubr.f32.mxu0 %v3325_v0  ;;  %1047 = vmatprep.mubr.f32.mxu1 %v3325_v0 }
 0x36a   :  { %3191 = vmatmul.mubr.msk.f32.gmra.mxu0 %vm98_vm0, %v3417_v12  ;;  %3195 = vmatmul.mubr.msk.f32.gmra.mxu1 %vm98_vm0, %v3417_v12 }
 0x36b   :  { %964 = vmatprep.mubr.f32.mxu0 %v3325_v0  ;;  %1053 = vmatprep.mubr.f32.mxu1 %v3325_v0 }
 0x36e   :  { %3192 = vmatmul.mubr.msk.f32.gmra.mxu0 %vm98_vm0, %v3434_v15  ;;  %3196 = vmatmul.mubr.msk.f32.gmra.mxu1 %vm98_vm0, %v3434_v15 }
 0x36f   :  { %1140 = vmatprep.mubr.f32.mxu0 %v3325_v0  ;;  %1211 = vmatprep.mubr.f32.mxu1 %v3325_v0 }
 0x422   :  { %v948_v8 = vpop.f32.mrf.mxu0  ;;  %v1037_v10 = vpop.f32.mrf.mxu1 }
 0x423   :  { %v949_v13 = vadd.f32 %v948_v8, %v865_v20  ;;  %v1038_v28 = vadd.f32 %v1037_v10, %v865_v20 }
 0x424   :  { %v950_v46 = vpop.f32.mrf.mxu0  ;;  %v1039_v47 = vpop.f32.mrf.mxu1 }
 0x425   :  { %v951_v25 = vadd.f32 %v950_v46, %v865_v20  ;;  %v1040_v26 = vadd.f32 %v1039_v47, %v865_v20  ;;  %v1060_v37 = vmax.f32 %v949_v13, 0.0  ;;  %v1062_v38 = vmax.f32 %v1038_v28, 0.0  ;;  %v3200_v47 = vld [vmem:[%s4005_s1 + $0x88] sm:$0xff] }
 0x426   :  { %v954_v48 = vpop.f32.mrf.mxu0  ;;  %v1043_v49 = vpop.f32.mrf.mxu1 }
 0x427   :  { %v955_v21 = vadd.f32 %v954_v48, %v870_v1  ;;  %v1044_v22 = vadd.f32 %v1043_v49, %v870_v1  ;;  %v1061_v35 = vmax.f32 %v951_v25, 0.0  ;;  %v1063_v36 = vmax.f32 %v1040_v26, 0.0  ;;  %v1256_v26 = vpop.permute.xlu0 %1255 }
 0x428   :  { %v956_v50 = vpop.f32.mrf.mxu0  ;;  %v1045_v51 = vpop.f32.mrf.mxu1  ;;  %v1218_v48 = vmul.f32 1.8946464, %v3622_v44  ;;  %v1220_v49 = vmul.f32 1.8946464, %v3624_v45 }
 0x429   :  { %v957_v16 = vadd.f32 %v956_v50, %v870_v1  ;;  %v1046_v17 = vadd.f32 %v1045_v51, %v870_v1  ;;  %v1064_v33 = vmax.f32 %v955_v21, 0.0  ;;  %v1066_v34 = vmax.f32 %v1044_v22, 0.0 }
 0x42a   :  { %v960_v52 = vpop.f32.mrf.mxu0  ;;  %v1049_v53 = vpop.f32.mrf.mxu1 }
 0x42b   :  { %v961_v7 = vadd.f32 %v960_v52, %v875_v2  ;;  %v1050_v14 = vadd.f32 %v1049_v53, %v875_v2  ;;  %v1065_v31 = vmax.f32 %v957_v16, 0.0  ;;  %v1067_v32 = vmax.f32 %v1046_v17, 0.0  ;;  %v3202_v52 = vld [vmem:[%s4005_s1 + $0x98] sm:$0xff] }
 0x42c   :  { %v962_v55 = vpop.f32.mrf.mxu0  ;;  %v1051_v56 = vpop.f32.mrf.mxu1 }
 0x42d   :  { %v963_v60 = vadd.f32 %v962_v55, %v875_v2  ;;  %v1052_v61 = vadd.f32 %v1051_v56, %v875_v2  ;;  %v1068_v29 = vmax.f32 %v961_v7, 0.0  ;;  %v1070_v30 = vmax.f32 %v1050_v14, 0.0  ;;  %v3201_v56 = vld [vmem:[%s4005_s1 + $0x90] sm:$0xff] }
 0x42e   :  { %v966_v3 = vpop.f32.mrf.mxu0  ;;  %v1055_v4 = vpop.f32.mrf.mxu1  ;;  %v1219_v2 = vmul.f32 1.8946464, %v3618_v42 }
 0x42f   :  { %v967_v5 = vadd.f32 %v966_v3, %v880_v54  ;;  %v1056_v57 = vadd.f32 %v1055_v4, %v880_v54  ;;  %v1069_v27 = vmax.f32 %v963_v60, 0.0  ;;  %v1071_v11 = vmax.f32 %v1052_v61, 0.0 }
 0x430   :  { %v968_v58 = vpop.f32.mrf.mxu0  ;;  %v1057_v59 = vpop.f32.mrf.mxu1  ;;  %v1221_v3 = vmul.f32 1.8946464, %v3620_v43  ;;  %v1236_v4 = vmul.f32 1.3376445, %v3200_v47 }
 0x431   :  { %v969_v62 = vadd.f32 %v968_v58, %v880_v54  ;;  %v1058_v63 = vadd.f32 %v1057_v59, %v880_v54  ;;  %v1072_v23 = vmax.f32 %v967_v5, 0.0  ;;  %v1074_v24 = vmax.f32 %v1056_v57, 0.0  ;;  %v3199_v54 = vld [vmem:[%s4005_s1 + $0x80] sm:$0xff] }
 0x432   :  { %v1238_v58 = vmul.f32 1.3376445, %v3202_v52  ;;  %v1235_v60 = vmul.f32 1.3376445, %v3199_v54 }
 0x433   :  { %v1073_v18 = vmax.f32 %v969_v62, 0.0  ;;  %v1075_v19 = vmax.f32 %v1058_v63, 0.0  ;;  %v1237_v62 = vmul.f32 1.3376445, %v3201_v56 }
 0x435   :  { %1100 = vmatprep.subr.mxu0 %v1073_v18  ;;  %1171 = vmatprep.subr.mxu1 %v1075_v19 }
 0x436   :  { %1101 = vmatpush1.msra.mxu0 %v1072_v23  ;;  %1172 = vmatpush1.msra.mxu1 %v1074_v24  ;;  %v1261_v23 = vpop.permute.xlu1 %1260 }
 0x437   :  { %1102 = vmatprep.subr.mxu0 %v1069_v27  ;;  %1173 = vmatprep.subr.mxu1 %v1071_v11 }
 0x438   :  { %1103 = vmatpush1.msra.mxu0 %v1068_v29  ;;  %1174 = vmatpush1.msra.mxu1 %v1070_v30 }
 0x439   :  { %1104 = vmatprep.subr.mxu0 %v1065_v31  ;;  %1175 = vmatprep.subr.mxu1 %v1067_v32 }
 0x43a   :  { %1105 = vmatpush1.msra.mxu0 %v1064_v33  ;;  %1176 = vmatpush1.msra.mxu1 %v1066_v34  ;;  %v1251_v34 = vpop.permute.xlu1 %1250 }
 0x43b   :  { %1106 = vmatprep.subr.mxu0 %v1061_v35  ;;  %1177 = vmatprep.subr.mxu1 %v1063_v36 }
 0x43c   :  { %1107 = vmatpush1.msra.mxu0 %v1060_v37  ;;  %1178 = vmatpush1.msra.mxu1 %v1062_v38 }
 0x43d   :  { %3197 = vmatmul.mubr.msk.f32.vlgmr.msra.gmra.mxu0 %vm310_vm1, %v3526_v40  ;;  %3198 = vmatmul.mubr.msk.f32.vlgmr.msra.gmra.mxu1 %vm310_vm1, %v3526_v40 }
 0x43e   :  { %1327 = vmatprep.mubr.f32.mxu0 %v3325_v0  ;;  %1416 = vmatprep.mubr.f32.mxu1 %v3325_v0 }
 0x4fd   :  { %v1142_v39 = vpop.f32.mrf.mxu0  ;;  %v1213_v8 = vpop.f32.mrf.mxu1 }
 0x4fe   :  { %v1143_v10 = vadd.f32 %v1142_v39, %v3534_v41  ;;  %v1214_v46 = vadd.f32 %v1213_v8, %v3534_v41 }
 0x4ff   :  { %v1144_v50 = vpop.f32.mrf.mxu0  ;;  %v1215_v51 = vpop.f32.mrf.mxu1 }
 0x500   :  { %v1222_v53 = vmul.f32 1.7945144, %v1143_v10  ;;  %v1224_v55 = vmul.f32 1.7945144, %v1214_v46  ;;  %v1145_v44 = vadd.f32 %v1144_v50, %v3534_v41  ;;  %v1216_v45 = vadd.f32 %v1215_v51, %v3534_v41  ;;  %v1246_v10 = vpop.permute.xlu0 %1245 }
 0x502   :  { %v1223_v5 = vmul.f32 1.7945144, %v1145_v44  ;;  %v1225_v57 = vmul.f32 1.7945144, %v1216_v45  ;;  %v1226_v59 = vsub.f32 %v1218_v48, %v1222_v53  ;;  %v1228_v61 = vsub.f32 %v1220_v49, %v1224_v55 }
 0x504   :  { %v1227_v63 = vsub.f32 %v1219_v2, %v1223_v5  ;;  %v1229_v1 = vsub.f32 %v1221_v3, %v1225_v57  ;;  %v3684_v16 = vadd.f32 %v1235_v60, %v1226_v59  ;;  %v3686_v17 = vadd.f32 %v1237_v62, %v1228_v61 }
 0x506   :  { %v3680_v7 = vadd.f32 %v1236_v4, %v1227_v63  ;;  %v3682_v14 = vadd.f32 %v1238_v58, %v1229_v1  ;;  %v3214_v1 = vld [vmem:[%s4005_s1 + $0x68] sm:$0xff] }
 0x508   :  { %1293 = vmatprep.subr.mxu0 %v3680_v7  ;;  %1382 = vmatprep.subr.mxu1 %v3682_v14 }
 0x509   :  { %1294 = vmatpush1.msra.mxu0 %v3684_v16  ;;  %1383 = vmatpush1.msra.mxu1 %v3686_v17 }
 0x50a   :  { %3203 = vmatmul.mubr.msk.f32.vlgmr.msra.gmra.mxu0 %vm98_vm0, %v3381_v6  ;;  %3207 = vmatmul.mubr.msk.f32.vlgmr.msra.gmra.mxu1 %vm98_vm0, %v3381_v6 }
 0x50b   :  { %1333 = vmatprep.mubr.f32.mxu0 %v3325_v0  ;;  %1422 = vmatprep.mubr.f32.mxu1 %v3325_v0 }
 0x50e   :  { %3204 = vmatmul.mubr.msk.f32.gmra.mxu0 %vm98_vm0, %v3400_v9  ;;  %3208 = vmatmul.mubr.msk.f32.gmra.mxu1 %vm98_vm0, %v3400_v9 }
 0x50f   :  { %1339 = vmatprep.mubr.f32.mxu0 %v3325_v0  ;;  %1428 = vmatprep.mubr.f32.mxu1 %v3325_v0 }
 0x512   :  { %3205 = vmatmul.mubr.msk.f32.gmra.mxu0 %vm98_vm0, %v3417_v12  ;;  %3209 = vmatmul.mubr.msk.f32.gmra.mxu1 %vm98_vm0, %v3417_v12 }
 0x513   :  { %1345 = vmatprep.mubr.f32.mxu0 %v3325_v0  ;;  %1434 = vmatprep.mubr.f32.mxu1 %v3325_v0 }
 0x516   :  { %3206 = vmatmul.mubr.msk.f32.gmra.mxu0 %vm98_vm0, %v3434_v15  ;;  %3210 = vmatmul.mubr.msk.f32.gmra.mxu1 %vm98_vm0, %v3434_v15 }
 0x517   :  { %1521 = vmatprep.mubr.f32.mxu0 %v3325_v0  ;;  %1592 = vmatprep.mubr.f32.mxu1 %v3325_v0 }
 0x5ca   :  { %v1329_v6 = vpop.f32.mrf.mxu0  ;;  %v1418_v9 = vpop.f32.mrf.mxu1 }
 0x5cb   :  { %v1330_v54 = vadd.f32 %v1329_v6, %v1246_v10  ;;  %v1419_v55 = vadd.f32 %v1418_v9, %v1246_v10  ;;  %v1599_v6 = vmul.f32 1.7169696, %v3684_v16  ;;  %v1601_v9 = vmul.f32 1.7169696, %v3686_v17 }
 0x5cc   :  { %v1331_v42 = vpop.f32.mrf.mxu0  ;;  %v1420_v43 = vpop.f32.mrf.mxu1 }
 0x5cd   :  { %v1332_v50 = vadd.f32 %v1331_v42, %v1246_v10  ;;  %v1421_v51 = vadd.f32 %v1420_v43, %v1246_v10  ;;  %v1441_v58 = vmax.f32 %v1330_v54, 0.0  ;;  %v1443_v59 = vmax.f32 %v1419_v55, 0.0  ;;  %v1637_v54 = vpop.permute.xlu0 %1636 }
 0x5ce   :  { %v1335_v18 = vpop.f32.mrf.mxu0  ;;  %v1424_v12 = vpop.f32.mrf.mxu1 }
 0x5cf   :  { %v1336_v46 = vadd.f32 %v1335_v18, %v1251_v34  ;;  %v1425_v47 = vadd.f32 %v1424_v12, %v1251_v34  ;;  %v1442_v5 = vmax.f32 %v1332_v50, 0.0  ;;  %v1444_v57 = vmax.f32 %v1421_v51, 0.0  ;;  %v3216_v18 = vld [vmem:[%s4005_s1 + $0x78] sm:$0xff]  ;;  %v1642_v51 = vpop.permute.xlu1 %1641 }
 0x5d0   :  { %v1337_v19 = vpop.f32.mrf.mxu0  ;;  %v1426_v20 = vpop.f32.mrf.mxu1 }
 0x5d1   :  { %v1338_v37 = vadd.f32 %v1337_v19, %v1251_v34  ;;  %v1427_v38 = vadd.f32 %v1426_v20, %v1251_v34  ;;  %v1445_v3 = vmax.f32 %v1336_v46, 0.0  ;;  %v1447_v4 = vmax.f32 %v1425_v47, 0.0  ;;  %v3213_v19 = vld [vmem:[%s4005_s1 + $0x60] sm:$0xff] }
 0x5d2   :  { %v1341_v21 = vpop.f32.mrf.mxu0  ;;  %v1430_v22 = vpop.f32.mrf.mxu1 }
 0x5d3   :  { %v1342_v35 = vadd.f32 %v1341_v21, %v1256_v26  ;;  %v1431_v36 = vadd.f32 %v1430_v22, %v1256_v26  ;;  %v1446_v45 = vmax.f32 %v1338_v37, 0.0  ;;  %v1448_v2 = vmax.f32 %v1427_v38, 0.0  ;;  %v3215_v21 = vld [vmem:[%s4005_s1 + $0x70] sm:$0xff] }
 0x5d4   :  { %v1343_v24 = vpop.f32.mrf.mxu0  ;;  %v1432_v25 = vpop.f32.mrf.mxu1  ;;  %v1600_v22 = vmul.f32 1.7169696, %v3680_v7  ;;  %v3757_v7 = vld [vmem:[%s4007_s3] sm:$0xff] }
 0x5d5   :  { %v1344_v30 = vadd.f32 %v1343_v24, %v1256_v26  ;;  %v1433_v31 = vadd.f32 %v1432_v25, %v1256_v26  ;;  %v1449_v56 = vmax.f32 %v1342_v35, 0.0  ;;  %v1451_v44 = vmax.f32 %v1431_v36, 0.0  ;;  %v3779_v35 = vld [vmem:[%s4007_s3 + $0x10] sm:$0xff]  ;;  %v3790_v36 = vld [vmem:[%s4007_s3 + $0x18] sm:$0xff] }
 0x5d6   :  { %v1347_v27 = vpop.f32.mrf.mxu0  ;;  %v1436_v15 = vpop.f32.mrf.mxu1  ;;  %v1617_v24 = vmul.f32 1.197472, %v3214_v1 }
 0x5d7   :  { %v1348_v11 = vadd.f32 %v1347_v27, %v1261_v23  ;;  %v1437_v13 = vadd.f32 %v1436_v15, %v1261_v23  ;;  %v1450_v52 = vmax.f32 %v1344_v30, 0.0  ;;  %v1452_v53 = vmax.f32 %v1433_v31, 0.0 }
 0x5d8   :  { %v1349_v28 = vpop.f32.mrf.mxu0  ;;  %v1438_v29 = vpop.f32.mrf.mxu1  ;;  %v1619_v27 = vmul.f32 1.197472, %v3216_v18 }
 0x5d9   :  { %v1350_v32 = vadd.f32 %v1349_v28, %v1261_v23  ;;  %v1439_v33 = vadd.f32 %v1438_v29, %v1261_v23  ;;  %v1453_v48 = vmax.f32 %v1348_v11, 0.0  ;;  %v1455_v49 = vmax.f32 %v1437_v13, 0.0 }
 0x5da   :  { %v1602_v23 = vmul.f32 1.7169696, %v3682_v14  ;;  %v1616_v11 = vmul.f32 1.197472, %v3213_v19  ;;  %v1618_v28 = vmul.f32 1.197472, %v3215_v21 }
 0x5db   :  { %v1454_v39 = vmax.f32 %v1350_v32, 0.0  ;;  %v1456_v8 = vmax.f32 %v1439_v33, 0.0  ;;  %v3768_v14 = vld [vmem:[%s4007_s3 + $0x8] sm:$0xff] }
 0x5dd   :  { %1481 = vmatprep.subr.mxu0 %v1454_v39  ;;  %1552 = vmatprep.subr.mxu1 %v1456_v8 }
 0x5de   :  { %1482 = vmatpush1.msra.mxu0 %v1453_v48  ;;  %1553 = vmatpush1.msra.mxu1 %v1455_v49 }
 0x5df   :  { %1483 = vmatprep.subr.mxu0 %v1450_v52  ;;  %1554 = vmatprep.subr.mxu1 %v1452_v53 }
 0x5e0   :  { %1484 = vmatpush1.msra.mxu0 %v1449_v56  ;;  %1555 = vmatpush1.msra.mxu1 %v1451_v44 }
 0x5e1   :  { %1485 = vmatprep.subr.mxu0 %v1446_v45  ;;  %1556 = vmatprep.subr.mxu1 %v1448_v2 }
 0x5e2   :  { %1486 = vmatpush1.msra.mxu0 %v1445_v3  ;;  %1557 = vmatpush1.msra.mxu1 %v1447_v4 }
 0x5e3   :  { %1487 = vmatprep.subr.mxu0 %v1442_v5  ;;  %1558 = vmatprep.subr.mxu1 %v1444_v57 }
 0x5e4   :  { %1488 = vmatpush1.msra.mxu0 %v1441_v58  ;;  %1559 = vmatpush1.msra.mxu1 %v1443_v59  ;;  %v1632_v59 = vpop.permute.xlu1 %1631 }
 0x5e5   :  { %3211 = vmatmul.mubr.msk.f32.vlgmr.msra.gmra.mxu0 %vm310_vm1, %v3526_v40  ;;  %3212 = vmatmul.mubr.msk.f32.vlgmr.msra.gmra.mxu1 %vm310_vm1, %v3526_v40 }
 0x5e6   :  { %1708 = vmatprep.mubr.f32.mxu0 %v3325_v0  ;;  %1797 = vmatprep.mubr.f32.mxu1 %v3325_v0 }
 0x6a5   :  { %v1523_v60 = vpop.f32.mrf.mxu0  ;;  %v1594_v61 = vpop.f32.mrf.mxu1 }
 0x6a6   :  { %v1524_v62 = vadd.f32 %v1523_v60, %v3534_v41  ;;  %v1595_v63 = vadd.f32 %v1594_v61, %v3534_v41 }
 0x6a7   :  { %v1525_v42 = vpop.f32.mrf.mxu0  ;;  %v1596_v43 = vpop.f32.mrf.mxu1 }
 0x6a8   :  { %v1603_v12 = vmul.f32 1.460966, %v1524_v62  ;;  %v1605_v20 = vmul.f32 1.460966, %v1595_v63  ;;  %v1526_v16 = vadd.f32 %v1525_v42, %v3534_v41  ;;  %v1597_v17 = vadd.f32 %v1596_v43, %v3534_v41 }
 0x6aa   :  { %v1604_v25 = vmul.f32 1.460966, %v1526_v16  ;;  %v1606_v26 = vmul.f32 1.460966, %v1597_v17  ;;  %v1607_v15 = vsub.f32 %v1599_v6, %v1603_v12  ;;  %v1609_v13 = vsub.f32 %v1601_v9, %v1605_v20  ;;  %v1627_v9 = vpop.permute.xlu0 %1626 }
 0x6ac   :  { %v1608_v29 = vsub.f32 %v1600_v22, %v1604_v25  ;;  %v1610_v30 = vsub.f32 %v1602_v23, %v1606_v26  ;;  %v3746_v33 = vadd.f32 %v1616_v11, %v1607_v15  ;;  %v3748_v34 = vadd.f32 %v1618_v28, %v1609_v13 }
 0x6ae   :  { %v3742_v31 = vadd.f32 %v1617_v24, %v1608_v29  ;;  %v3744_v32 = vadd.f32 %v1619_v27, %v1610_v30 }
 0x6b0   :  { %1674 = vmatprep.subr.mxu0 %v3742_v31  ;;  %1763 = vmatprep.subr.mxu1 %v3744_v32 }
 0x6b1   :  { %1675 = vmatpush1.msra.mxu0 %v3746_v33  ;;  %1764 = vmatpush1.msra.mxu1 %v3748_v34 }
 0x6b2   :  { %3217 = vmatmul.mubr.msk.f32.vlgmr.msra.gmra.mxu0 %vm98_vm0, %v3757_v7  ;;  %3221 = vmatmul.mubr.msk.f32.vlgmr.msra.gmra.mxu1 %vm98_vm0, %v3757_v7 }
 0x6b3   :  { %1714 = vmatprep.mubr.f32.mxu0 %v3325_v0  ;;  %1803 = vmatprep.mubr.f32.mxu1 %v3325_v0 }
 0x6b6   :  { %3218 = vmatmul.mubr.msk.f32.gmra.mxu0 %vm98_vm0, %v3768_v14  ;;  %3222 = vmatmul.mubr.msk.f32.gmra.mxu1 %vm98_vm0, %v3768_v14 }
 0x6b7   :  { %1720 = vmatprep.mubr.f32.mxu0 %v3325_v0  ;;  %1809 = vmatprep.mubr.f32.mxu1 %v3325_v0 }
 0x6ba   :  { %3219 = vmatmul.mubr.msk.f32.gmra.mxu0 %vm98_vm0, %v3779_v35  ;;  %3223 = vmatmul.mubr.msk.f32.gmra.mxu1 %vm98_vm0, %v3779_v35 }
 0x6bb   :  { %1726 = vmatprep.mubr.f32.mxu0 %v3325_v0  ;;  %1815 = vmatprep.mubr.f32.mxu1 %v3325_v0 }
 0x6be   :  { %3220 = vmatmul.mubr.msk.f32.gmra.mxu0 %vm98_vm0, %v3790_v36  ;;  %3224 = vmatmul.mubr.msk.f32.gmra.mxu1 %vm98_vm0, %v3790_v36 }
 0x6bf   :  { %1902 = vmatprep.mubr.f32.mxu0 %v3325_v0  ;;  %1973 = vmatprep.mubr.f32.mxu1 %v3325_v0 }
 0x772   :  { %v1710_v37 = vpop.f32.mrf.mxu0  ;;  %v1799_v38 = vpop.f32.mrf.mxu1 }
 0x773   :  { %v1711_v17 = vadd.f32 %v1710_v37, %v1627_v9  ;;  %v1800_v22 = vadd.f32 %v1799_v38, %v1627_v9 }
 0x774   :  { %v1712_v39 = vpop.f32.mrf.mxu0  ;;  %v1801_v8 = vpop.f32.mrf.mxu1 }
 0x775   :  { %v1713_v19 = vadd.f32 %v1712_v39, %v1627_v9  ;;  %v1802_v20 = vadd.f32 %v1801_v8, %v1627_v9  ;;  %v1822_v28 = vmax.f32 %v1711_v17, 0.0  ;;  %v1824_v29 = vmax.f32 %v1800_v22, 0.0  ;;  %v3228_v8 = vld [vmem:[%s4005_s1 + $0x48] sm:$0xff] }
 0x776   :  { %v1716_v10 = vpop.f32.mrf.mxu0  ;;  %v1805_v46 = vpop.f32.mrf.mxu1 }
 0x777   :  { %v1717_v42 = vadd.f32 %v1716_v10, %v1632_v59  ;;  %v1806_v43 = vadd.f32 %v1805_v46, %v1632_v59  ;;  %v1823_v11 = vmax.f32 %v1713_v19, 0.0  ;;  %v1825_v13 = vmax.f32 %v1802_v20, 0.0  ;;  %v2023_v19 = vpop.permute.xlu1 %2022 }
 0x778   :  { %v1718_v47 = vpop.f32.mrf.mxu0  ;;  %v1807_v48 = vpop.f32.mrf.mxu1  ;;  %v1980_v10 = vmul.f32 1.5392928, %v3746_v33  ;;  %v1982_v46 = vmul.f32 1.5392928, %v3748_v34 }
 0x779   :  { %v1719_v62 = vadd.f32 %v1718_v47, %v1632_v59  ;;  %v1808_v63 = vadd.f32 %v1807_v48, %v1632_v59  ;;  %v1826_v27 = vmax.f32 %v1717_v42, 0.0  ;;  %v1828_v15 = vmax.f32 %v1806_v43, 0.0  ;;  %v3230_v48 = vld [vmem:[%s4005_s1 + $0x58] sm:$0xff] }
 0x77a   :  { %v1722_v49 = vpop.f32.mrf.mxu0  ;;  %v1811_v50 = vpop.f32.mrf.mxu1 }
 0x77b   :  { %v1723_v60 = vadd.f32 %v1722_v49, %v1637_v54  ;;  %v1812_v61 = vadd.f32 %v1811_v50, %v1637_v54  ;;  %v1827_v25 = vmax.f32 %v1719_v62, 0.0  ;;  %v1829_v26 = vmax.f32 %v1808_v63, 0.0  ;;  %v3227_v50 = vld [vmem:[%s4005_s1 + $0x40] sm:$0xff] }
 0x77c   :  { %v1724_v52 = vpop.f32.mrf.mxu0  ;;  %v1813_v53 = vpop.f32.mrf.mxu1 }
 0x77d   :  { %v1725_v4 = vadd.f32 %v1724_v52, %v1637_v54  ;;  %v1814_v5 = vadd.f32 %v1813_v53, %v1637_v54  ;;  %v1830_v23 = vmax.f32 %v1723_v60, 0.0  ;;  %v1832_v24 = vmax.f32 %v1812_v61, 0.0  ;;  %v3229_v52 = vld [vmem:[%s4005_s1 + $0x50] sm:$0xff] }
 0x77e   :  { %v1728_v55 = vpop.f32.mrf.mxu0  ;;  %v1817_v56 = vpop.f32.mrf.mxu1  ;;  %v1981_v53 = vmul.f32 1.5392928, %v3742_v31  ;;  %v1983_v54 = vmul.f32 1.5392928, %v3744_v32 }
 0x77f   :  { %v1729_v44 = vadd.f32 %v1728_v55, %v1642_v51  ;;  %v1818_v45 = vadd.f32 %v1817_v56, %v1642_v51  ;;  %v1831_v21 = vmax.f32 %v1725_v4, 0.0  ;;  %v1833_v16 = vmax.f32 %v1814_v5, 0.0 }
 0x780   :  { %v1730_v2 = vpop.f32.mrf.mxu0  ;;  %v1819_v3 = vpop.f32.mrf.mxu1  ;;  %v1998_v55 = vmul.f32 1.0385498, %v3228_v8  ;;  %v1999_v5 = vmul.f32 1.0385498, %v3229_v52 }
 0x781   :  { %v1731_v57 = vadd.f32 %v1730_v2, %v1642_v51  ;;  %v1820_v58 = vadd.f32 %v1819_v3, %v1642_v51  ;;  %v1834_v18 = vmax.f32 %v1729_v44, 0.0  ;;  %v1836_v12 = vmax.f32 %v1818_v45, 0.0 }
 0x782   :  { %v2000_v45 = vmul.f32 1.0385498, %v3230_v48  ;;  %v1997_v3 = vmul.f32 1.0385498, %v3227_v50 }
 0x783   :  { %v1835_v1 = vmax.f32 %v1731_v57, 0.0  ;;  %v1837_v6 = vmax.f32 %v1820_v58, 0.0 }
 0x785   :  { %1862 = vmatprep.subr.mxu0 %v1835_v1  ;;  %1933 = vmatprep.subr.mxu1 %v1837_v6 }
 0x786   :  { %1863 = vmatpush1.msra.mxu0 %v1834_v18  ;;  %1934 = vmatpush1.msra.mxu1 %v1836_v12 }
 0x787   :  { %1864 = vmatprep.subr.mxu0 %v1831_v21  ;;  %1935 = vmatprep.subr.mxu1 %v1833_v16  ;;  %v2018_v16 = vpop.permute.xlu0 %2017 }
 0x788   :  { %1865 = vmatpush1.msra.mxu0 %v1830_v23  ;;  %1936 = vmatpush1.msra.mxu1 %v1832_v24 }
 0x789   :  { %1866 = vmatprep.subr.mxu0 %v1827_v25  ;;  %1937 = vmatprep.subr.mxu1 %v1829_v26 }
 0x78a   :  { %1867 = vmatpush1.msra.mxu0 %v1826_v27  ;;  %1938 = vmatpush1.msra.mxu1 %v1828_v15 }
 0x78b   :  { %1868 = vmatprep.subr.mxu0 %v1823_v11  ;;  %1939 = vmatprep.subr.mxu1 %v1825_v13 }
 0x78c   :  { %1869 = vmatpush1.msra.mxu0 %v1822_v28  ;;  %1940 = vmatpush1.msra.mxu1 %v1824_v29  ;;  %v2013_v28 = vpop.permute.xlu1 %2012 }
 0x78d   :  { %3225 = vmatmul.mubr.msk.f32.vlgmr.msra.gmra.mxu0 %vm310_vm1, %v3526_v40  ;;  %3226 = vmatmul.mubr.msk.f32.vlgmr.msra.gmra.mxu1 %vm310_vm1, %v3526_v40 }
 0x78e   :  { %2089 = vmatprep.mubr.f32.mxu0 %v3325_v0  ;;  %2178 = vmatprep.mubr.f32.mxu1 %v3325_v0 }
 0x84d   :  { %v1904_v30 = vpop.f32.mrf.mxu0  ;;  %v1975_v37 = vpop.f32.mrf.mxu1 }
 0x84e   :  { %v1905_v38 = vadd.f32 %v1904_v30, %v3534_v41  ;;  %v1976_v39 = vadd.f32 %v1975_v37, %v3534_v41 }
 0x84f   :  { %v1906_v47 = vpop.f32.mrf.mxu0  ;;  %v1977_v40 = vpop.f32.mrf.mxu1 }
 0x850   :  { %v1984_v49 = vmul.f32 1.1726897, %v1905_v38  ;;  %v1986_v51 = vmul.f32 1.1726897, %v1976_v39  ;;  %v1907_v33 = vadd.f32 %v1906_v47, %v3534_v41  ;;  %v1978_v34 = vadd.f32 %v1977_v40, %v3534_v41 }
 0x852   :  { %v1985_v56 = vmul.f32 1.1726897, %v1907_v33  ;;  %v1987_v44 = vmul.f32 1.1726897, %v1978_v34  ;;  %v1988_v2 = vsub.f32 %v1980_v10, %v1984_v49  ;;  %v1990_v4 = vsub.f32 %v1982_v46, %v1986_v51  ;;  %v2008_v10 = vpop.permute.xlu0 %2007 }
 0x854   :  { %v1989_v57 = vsub.f32 %v1981_v53, %v1985_v56  ;;  %v1991_v58 = vsub.f32 %v1983_v54, %v1987_v44  ;;  %v3828_v61 = vadd.f32 %v1997_v3, %v1988_v2  ;;  %v3830_v62 = vadd.f32 %v1999_v5, %v1990_v4 }
 0x856   :  { %v3824_v59 = vadd.f32 %v1998_v55, %v1989_v57  ;;  %v3826_v60 = vadd.f32 %v2000_v45, %v1991_v58  ;;  %v3863_v57 = vld [vmem:[%s4008_s4] sm:$0xff] }
 0x858   :  { %2055 = vmatprep.subr.mxu0 %v3824_v59  ;;  %2144 = vmatprep.subr.mxu1 %v3826_v60 }
 0x859   :  { %2056 = vmatpush1.msra.mxu0 %v3828_v61  ;;  %2145 = vmatpush1.msra.mxu1 %v3830_v62 }
 0x85a   :  { %3231 = vmatmul.mubr.msk.f32.vlgmr.msra.gmra.mxu0 %vm98_vm0, %v3757_v7  ;;  %3235 = vmatmul.mubr.msk.f32.vlgmr.msra.gmra.mxu1 %vm98_vm0, %v3757_v7 }
 0x85b   :  { %2095 = vmatprep.mubr.f32.mxu0 %v3325_v0  ;;  %2184 = vmatprep.mubr.f32.mxu1 %v3325_v0 }
 0x85e   :  { %3232 = vmatmul.mubr.msk.f32.gmra.mxu0 %vm98_vm0, %v3768_v14  ;;  %3236 = vmatmul.mubr.msk.f32.gmra.mxu1 %vm98_vm0, %v3768_v14 }
 0x85f   :  { %2101 = vmatprep.mubr.f32.mxu0 %v3325_v0  ;;  %2190 = vmatprep.mubr.f32.mxu1 %v3325_v0 }
 0x862   :  { %3233 = vmatmul.mubr.msk.f32.gmra.mxu0 %vm98_vm0, %v3779_v35  ;;  %3237 = vmatmul.mubr.msk.f32.gmra.mxu1 %vm98_vm0, %v3779_v35 }
 0x863   :  { %2107 = vmatprep.mubr.f32.mxu0 %v3325_v0  ;;  %2196 = vmatprep.mubr.f32.mxu1 %v3325_v0 }
 0x866   :  { %3234 = vmatmul.mubr.msk.f32.gmra.mxu0 %vm98_vm0, %v3790_v36  ;;  %3238 = vmatmul.mubr.msk.f32.gmra.mxu1 %vm98_vm0, %v3790_v36 }
 0x867   :  { %2283 = vmatprep.mubr.f32.mxu0 %v3325_v0  ;;  %2354 = vmatprep.mubr.f32.mxu1 %v3325_v0 }
 0x91a   :  { %v2091_v31 = vpop.f32.mrf.mxu0  ;;  %v2180_v32 = vpop.f32.mrf.mxu1 }
 0x91b   :  { %v2092_v33 = vadd.f32 %v2091_v31, %v2008_v10  ;;  %v2181_v34 = vadd.f32 %v2180_v32, %v2008_v10 }
 0x91c   :  { %v2093_v63 = vpop.f32.mrf.mxu0  ;;  %v2182_v1 = vpop.f32.mrf.mxu1 }
 0x91d   :  { %v2094_v49 = vadd.f32 %v2093_v63, %v2008_v10  ;;  %v2183_v50 = vadd.f32 %v2182_v1, %v2008_v10  ;;  %v2203_v4 = vmax.f32 %v2092_v33, 0.0  ;;  %v2205_v5 = vmax.f32 %v2181_v34, 0.0  ;;  %v3242_v1 = vld [vmem:[%s4005_s1 + $0x28] sm:$0xff]  ;;  %v2399_v33 = vpop.permute.xlu0 %2398 }
 0x91e   :  { %v2097_v6 = vpop.f32.mrf.mxu0  ;;  %v2186_v9 = vpop.f32.mrf.mxu1 }
 0x91f   :  { %v2098_v46 = vadd.f32 %v2097_v6, %v2013_v28  ;;  %v2187_v47 = vadd.f32 %v2186_v9, %v2013_v28  ;;  %v2204_v2 = vmax.f32 %v2094_v49, 0.0  ;;  %v2206_v3 = vmax.f32 %v2183_v50, 0.0  ;;  %v2404_v50 = vpop.permute.xlu1 %2403 }
 0x920   :  { %v2099_v42 = vpop.f32.mrf.mxu0  ;;  %v2188_v43 = vpop.f32.mrf.mxu1  ;;  %v2361_v6 = vmul.f32 1.361616, %v3828_v61  ;;  %v2363_v9 = vmul.f32 1.361616, %v3830_v62 }
 0x921   :  { %v2100_v37 = vadd.f32 %v2099_v42, %v2013_v28  ;;  %v2189_v38 = vadd.f32 %v2188_v43, %v2013_v28  ;;  %v2207_v44 = vmax.f32 %v2098_v46, 0.0  ;;  %v2209_v45 = vmax.f32 %v2187_v47, 0.0 }
 0x922   :  { %v2103_v18 = vpop.f32.mrf.mxu0  ;;  %v2192_v12 = vpop.f32.mrf.mxu1 }
 0x923   :  { %v2104_v29 = vadd.f32 %v2103_v18, %v2018_v16  ;;  %v2193_v30 = vadd.f32 %v2192_v12, %v2018_v16  ;;  %v2208_v55 = vmax.f32 %v2100_v37, 0.0  ;;  %v2210_v56 = vmax.f32 %v2189_v38, 0.0  ;;  %v3244_v18 = vld [vmem:[%s4005_s1 + $0x38] sm:$0xff] }
 0x924   :  { %v2105_v20 = vpop.f32.mrf.mxu0  ;;  %v2194_v21 = vpop.f32.mrf.mxu1 }
 0x925   :  { %v2106_v27 = vadd.f32 %v2105_v20, %v2018_v16  ;;  %v2195_v15 = vadd.f32 %v2194_v21, %v2018_v16  ;;  %v2211_v53 = vmax.f32 %v2104_v29, 0.0  ;;  %v2213_v54 = vmax.f32 %v2193_v30, 0.0  ;;  %v3243_v21 = vld [vmem:[%s4005_s1 + $0x30] sm:$0xff] }
 0x926   :  { %v2109_v17 = vpop.f32.mrf.mxu0  ;;  %v2198_v22 = vpop.f32.mrf.mxu1  ;;  %v2362_v16 = vmul.f32 1.361616, %v3824_v59 }
 0x927   :  { %v2110_v23 = vadd.f32 %v2109_v17, %v2023_v19  ;;  %v2199_v24 = vadd.f32 %v2198_v22, %v2023_v19  ;;  %v2212_v51 = vmax.f32 %v2106_v27, 0.0  ;;  %v2214_v52 = vmax.f32 %v2195_v15, 0.0 }
 0x928   :  { %v2111_v25 = vpop.f32.mrf.mxu0  ;;  %v2200_v26 = vpop.f32.mrf.mxu1  ;;  %v2364_v17 = vmul.f32 1.361616, %v3826_v60  ;;  %v2379_v22 = vmul.f32 0.8504305, %v3242_v1 }
 0x929   :  { %v2112_v11 = vadd.f32 %v2111_v25, %v2023_v19  ;;  %v2201_v13 = vadd.f32 %v2200_v26, %v2023_v19  ;;  %v2215_v40 = vmax.f32 %v2110_v23, 0.0  ;;  %v2217_v48 = vmax.f32 %v2199_v24, 0.0  ;;  %v3241_v19 = vld [vmem:[%s4005_s1 + $0x20] sm:$0xff] }
 0x92a   :  { %v2381_v25 = vmul.f32 0.8504305, %v3244_v18  ;;  %v2378_v27 = vmul.f32 0.8504305, %v3241_v19 }
 0x92b   :  { %v2216_v39 = vmax.f32 %v2112_v11, 0.0  ;;  %v2218_v8 = vmax.f32 %v2201_v13, 0.0  ;;  %v2380_v11 = vmul.f32 0.8504305, %v3243_v21 }
 0x92d   :  { %2243 = vmatprep.subr.mxu0 %v2216_v39  ;;  %2314 = vmatprep.subr.mxu1 %v2218_v8 }
 0x92e   :  { %2244 = vmatpush1.msra.mxu0 %v2215_v40  ;;  %2315 = vmatpush1.msra.mxu1 %v2217_v48 }
 0x92f   :  { %2245 = vmatprep.subr.mxu0 %v2212_v51  ;;  %2316 = vmatprep.subr.mxu1 %v2214_v52 }
 0x930   :  { %2246 = vmatpush1.msra.mxu0 %v2211_v53  ;;  %2317 = vmatpush1.msra.mxu1 %v2213_v54 }
 0x931   :  { %2247 = vmatprep.subr.mxu0 %v2208_v55  ;;  %2318 = vmatprep.subr.mxu1 %v2210_v56 }
 0x932   :  { %2248 = vmatpush1.msra.mxu0 %v2207_v44  ;;  %2319 = vmatpush1.msra.mxu1 %v2209_v45 }
 0x933   :  { %2249 = vmatprep.subr.mxu0 %v2204_v2  ;;  %2320 = vmatprep.subr.mxu1 %v2206_v3 }
 0x934   :  { %2250 = vmatpush1.msra.mxu0 %v2203_v4  ;;  %2321 = vmatpush1.msra.mxu1 %v2205_v5  ;;  %v2394_v5 = vpop.permute.xlu1 %2393 }
 0x935   :  { %3239 = vmatmul.mubr.msk.f32.vlgmr.msra.gmra.mxu0 %vm310_vm1, %v3863_v57  ;;  %3240 = vmatmul.mubr.msk.f32.vlgmr.msra.gmra.mxu1 %vm310_vm1, %v3863_v57 }
 0x936   :  { %2470 = vmatprep.mubr.f32.mxu0 %v3325_v0  ;;  %2559 = vmatprep.mubr.f32.mxu1 %v3325_v0 }
 0x9f5   :  { %v2285_v58 = vpop.f32.mrf.mxu0  ;;  %v2356_v31 = vpop.f32.mrf.mxu1 }
 0x9f6   :  { %v2286_v32 = vadd.f32 %v2285_v58, %v3534_v41  ;;  %v2357_v63 = vadd.f32 %v2356_v31, %v3534_v41 }
 0x9f7   :  { %v2287_v42 = vpop.f32.mrf.mxu0  ;;  %v2358_v43 = vpop.f32.mrf.mxu1 }
 0x9f8   :  { %v2365_v12 = vmul.f32 0.9590726, %v2286_v32  ;;  %v2367_v20 = vmul.f32 0.9590726, %v2357_v63  ;;  %v2288_v61 = vadd.f32 %v2287_v42, %v3534_v41  ;;  %v2359_v62 = vadd.f32 %v2358_v43, %v3534_v41 }
 0x9fa   :  { %v2366_v23 = vmul.f32 0.9590726, %v2288_v61  ;;  %v2368_v24 = vmul.f32 0.9590726, %v2359_v62  ;;  %v2369_v26 = vsub.f32 %v2361_v6, %v2365_v12  ;;  %v2371_v15 = vsub.f32 %v2363_v9, %v2367_v20  ;;  %v2389_v9 = vpop.permute.xlu0 %2388 }
 0x9fc   :  { %v2370_v13 = vsub.f32 %v2362_v16, %v2366_v23  ;;  %v2372_v28 = vsub.f32 %v2364_v17, %v2368_v24  ;;  %v3895_v37 = vadd.f32 %v2378_v27, %v2369_v26  ;;  %v3897_v38 = vadd.f32 %v2380_v11, %v2371_v15 }
 0x9fe   :  { %v3891_v29 = vadd.f32 %v2379_v22, %v2370_v13  ;;  %v3893_v30 = vadd.f32 %v2381_v25, %v2372_v28 }
 0xa00   :  { %2436 = vmatprep.subr.mxu0 %v3891_v29  ;;  %2525 = vmatprep.subr.mxu1 %v3893_v30 }
 0xa01   :  { %2437 = vmatpush1.msra.mxu0 %v3895_v37  ;;  %2526 = vmatpush1.msra.mxu1 %v3897_v38 }
 0xa02   :  { %3245 = vmatmul.mubr.msk.f32.vlgmr.msra.gmra.mxu0 %vm98_vm0, %v3757_v7  ;;  %3249 = vmatmul.mubr.msk.f32.vlgmr.msra.gmra.mxu1 %vm98_vm0, %v3757_v7 }
 0xa03   :  { %2476 = vmatprep.mubr.f32.mxu0 %v3325_v0  ;;  %2565 = vmatprep.mubr.f32.mxu1 %v3325_v0 }
 0xa06   :  { %3246 = vmatmul.mubr.msk.f32.gmra.mxu0 %vm98_vm0, %v3768_v14  ;;  %3250 = vmatmul.mubr.msk.f32.gmra.mxu1 %vm98_vm0, %v3768_v14 }
 0xa07   :  { %2482 = vmatprep.mubr.f32.mxu0 %v3325_v0  ;;  %2571 = vmatprep.mubr.f32.mxu1 %v3325_v0 }
 0xa0a   :  { %3247 = vmatmul.mubr.msk.f32.gmra.mxu0 %vm98_vm0, %v3779_v35  ;;  %3251 = vmatmul.mubr.msk.f32.gmra.mxu1 %vm98_vm0, %v3779_v35 }
 0xa0b   :  { %2488 = vmatprep.mubr.f32.mxu0 %v3325_v0  ;;  %2577 = vmatprep.mubr.f32.mxu1 %v3325_v0 }
 0xa0e   :  { %3248 = vmatmul.mubr.msk.f32.gmra.mxu0 %vm98_vm0, %v3790_v36  ;;  %3252 = vmatmul.mubr.msk.f32.gmra.mxu1 %vm98_vm0, %v3790_v36 }
 0xa0f   :  { %2664 = vmatprep.mubr.f32.mxu0 %v3325_v0  ;;  %2735 = vmatprep.mubr.f32.mxu1 %v3325_v0 }
 0xac2   :  { %v2472_v59 = vpop.f32.mrf.mxu0  ;;  %v2561_v60 = vpop.f32.mrf.mxu1 }
 0xac3   :  { %v2473_v62 = vadd.f32 %v2472_v59, %v2389_v9  ;;  %v2562_v16 = vadd.f32 %v2561_v60, %v2389_v9 }
 0xac4   :  { %v2474_v39 = vpop.f32.mrf.mxu0  ;;  %v2563_v8 = vpop.f32.mrf.mxu1 }
 0xac5   :  { %v2475_v19 = vadd.f32 %v2474_v39, %v2389_v9  ;;  %v2564_v20 = vadd.f32 %v2563_v8, %v2389_v9  ;;  %v2584_v11 = vmax.f32 %v2473_v62, 0.0  ;;  %v2586_v13 = vmax.f32 %v2562_v16, 0.0  ;;  %v2755_v8 = vld [vmem:[%s4005_s1 + $0x8] sm:$0xff] }
 0xac6   :  { %v2478_v10 = vpop.f32.mrf.mxu0  ;;  %v2567_v46 = vpop.f32.mrf.mxu1 }
 0xac7   :  { %v2479_v42 = vadd.f32 %v2478_v10, %v2394_v5  ;;  %v2568_v43 = vadd.f32 %v2567_v46, %v2394_v5  ;;  %v2585_v27 = vmax.f32 %v2475_v19, 0.0  ;;  %v2587_v15 = vmax.f32 %v2564_v20, 0.0  ;;  %v2779_v20 = vpop.permute.xlu0 %2778 }
 0xac8   :  { %v2480_v47 = vpop.f32.mrf.mxu0  ;;  %v2569_v40 = vpop.f32.mrf.mxu1  ;;  %v2742_v10 = vmul.f32 1.1839392, %v3895_v37  ;;  %v2744_v46 = vmul.f32 1.1839392, %v3897_v38 }
 0xac9   :  { %v2481_v32 = vadd.f32 %v2480_v47, %v2394_v5  ;;  %v2570_v63 = vadd.f32 %v2569_v40, %v2394_v5  ;;  %v2588_v25 = vmax.f32 %v2479_v42, 0.0  ;;  %v2590_v26 = vmax.f32 %v2568_v43, 0.0 }
 0xaca   :  { %v2484_v48 = vpop.f32.mrf.mxu0  ;;  %v2573_v49 = vpop.f32.mrf.mxu1 }
 0xacb   :  { %v2485_v58 = vadd.f32 %v2484_v48, %v2399_v33  ;;  %v2574_v31 = vadd.f32 %v2573_v49, %v2399_v33  ;;  %v2589_v23 = vmax.f32 %v2481_v32, 0.0  ;;  %v2591_v24 = vmax.f32 %v2570_v63, 0.0  ;;  %v2757_v48 = vld [vmem:[%s4005_s1 + $0x18] sm:$0xff] }
 0xacc   :  { %v2486_v51 = vpop.f32.mrf.mxu0  ;;  %v2575_v52 = vpop.f32.mrf.mxu1 }
 0xacd   :  { %v2487_v45 = vadd.f32 %v2486_v51, %v2399_v33  ;;  %v2576_v2 = vadd.f32 %v2575_v52, %v2399_v33  ;;  %v2592_v17 = vmax.f32 %v2485_v58, 0.0  ;;  %v2594_v22 = vmax.f32 %v2574_v31, 0.0  ;;  %v2756_v52 = vld [vmem:[%s4005_s1 + $0x10] sm:$0xff] }
 0xace   :  { %v2490_v34 = vpop.f32.mrf.mxu0  ;;  %v2579_v53 = vpop.f32.mrf.mxu1  ;;  %v2743_v33 = vmul.f32 1.1839392, %v3891_v29 }
 0xacf   :  { %v2491_v54 = vadd.f32 %v2490_v34, %v2404_v50  ;;  %v2580_v55 = vadd.f32 %v2579_v53, %v2404_v50  ;;  %v2593_v21 = vmax.f32 %v2487_v45, 0.0  ;;  %v2595_v61 = vmax.f32 %v2576_v2, 0.0 }
 0xad0   :  { %v2492_v56 = vpop.f32.mrf.mxu0  ;;  %v2581_v44 = vpop.f32.mrf.mxu1  ;;  %v2745_v34 = vmul.f32 1.1839392, %v3893_v30  ;;  %v2759_v53 = vmul.f32 0.60652983, %v2755_v8 }
 0xad1   :  { %v2493_v3 = vadd.f32 %v2492_v56, %v2404_v50  ;;  %v2582_v4 = vadd.f32 %v2581_v44, %v2404_v50  ;;  %v2596_v18 = vmax.f32 %v2491_v54, 0.0  ;;  %v2598_v12 = vmax.f32 %v2580_v55, 0.0  ;;  %v2754_v50 = vld [vmem:[%s4005_s1] sm:$0xff]  ;;  %s3327_s1 = smov [#allocation5]  }
 0xad2   :  { %v2761_v56 = vmul.f32 0.60652983, %v2757_v48  ;;  %v2758_v45 = vmul.f32 0.60652983, %v2754_v50  ;;  %s3152_s8 = sshll.u32 %s3327_s1, 4  ;;  %s3153_s8 = int_to_ptr.vmem [resolvable:$true] %s3152_s8 }
 0xad3   :  { %v2597_v1 = vmax.f32 %v2493_v3, 0.0  ;;  %v2599_v6 = vmax.f32 %v2582_v4, 0.0  ;;  %v2760_v3 = vmul.f32 0.60652983, %v2756_v52  ;;  %s3300_s9 = scalar_lea.vmem %s3153_s8, 512  ;;  %p3305_p6 = scmp.lt.s32.totalorder %s3153_s8, %s3153_s8 }
 0xad4   :  { %p3301_p5 = scmp.ne.s32.totalorder %s3153_s8, %s3300_s9  ;;  %p3306_p7 = scmp.lt.s32.totalorder %s3300_s9, %s3300_s9 }
 0xad5   :  { %2624 = vmatprep.subr.mxu0 %v2597_v1  ;;  %2695 = vmatprep.subr.mxu1 %v2599_v6 }
 0xad6   :  { %2625 = vmatpush1.msra.mxu0 %v2596_v18  ;;  %2696 = vmatpush1.msra.mxu1 %v2598_v12  ;;  %v2784_v18 = vpop.permute.xlu1 %2783  ;;  %p3307_p8 = por %p3306_p7, %p3305_p6 }
 0xad7   :  { %2626 = vmatprep.subr.mxu0 %v2593_v21  ;;  %2697 = vmatprep.subr.mxu1 %v2595_v61 }
 0xad8   :  { %2627 = vmatpush1.msra.mxu0 %v2592_v17  ;;  %2698 = vmatpush1.msra.mxu1 %v2594_v22  ;;  %p3308_p9 = pnand %p3307_p8, %p3301_p5 }
 0xad9   :  { %2628 = vmatprep.subr.mxu0 %v2589_v23  ;;  %2699 = vmatprep.subr.mxu1 %v2591_v24 }
 0xada   :  { %2629 = vmatpush1.msra.mxu0 %v2588_v25  ;;  %2700 = vmatpush1.msra.mxu1 %v2590_v26  ;;  %v2774_v25 = vpop.permute.xlu1 %2773 }
 0xadb   :  { %2630 = vmatprep.subr.mxu0 %v2585_v27  ;;  %2701 = vmatprep.subr.mxu1 %v2587_v15 }
 0xadc   :  { %2631 = vmatpush1.msra.mxu0 %v2584_v11  ;;  %2702 = vmatpush1.msra.mxu1 %v2586_v13 }
 0xadd   :  { %3253 = vmatmul.mubr.msk.f32.vlgmr.msra.gmra.mxu0 %vm310_vm1, %v3863_v57  ;;  %3254 = vmatmul.mubr.msk.f32.vlgmr.msra.gmra.mxu1 %vm310_vm1, %v3863_v57 }
 0xade   :  { %2850 = vmatprep.mubr.f32.mxu0 %v3325_v0  ;;  %2939 = vmatprep.mubr.f32.mxu1 %v3325_v0 }
 0xb9d   :  { %v2666_v28 = vpop.f32.mrf.mxu0  ;;  %v2737_v59 = vpop.f32.mrf.mxu1 }
 0xb9e   :  { %v2667_v60 = vadd.f32 %v2666_v28, %v3534_v41  ;;  %v2738_v39 = vadd.f32 %v2737_v59, %v3534_v41  ;;  %v2769_v59 = vpop.permute.xlu0 %2768 }
 0xb9f   :  { %v2668_v47 = vpop.f32.mrf.mxu0  ;;  %v2739_v40 = vpop.f32.mrf.mxu1 }
 0xba0   :  { %v2746_v49 = vmul.f32 0.83229244, %v2667_v60  ;;  %v2748_v51 = vmul.f32 0.83229244, %v2738_v39  ;;  %v2669_v37 = vadd.f32 %v2668_v47, %v3534_v41  ;;  %v2740_v38 = vadd.f32 %v2739_v40, %v3534_v41 }
 0xba2   :  { %v2747_v54 = vmul.f32 0.83229244, %v2669_v37  ;;  %v2749_v55 = vmul.f32 0.83229244, %v2740_v38  ;;  %v2750_v44 = vsub.f32 %v2742_v10, %v2746_v49  ;;  %v2752_v2 = vsub.f32 %v2744_v46, %v2748_v51 }
 0xba4   :  { %v2751_v4 = vsub.f32 %v2743_v33, %v2747_v54  ;;  %v2753_v5 = vsub.f32 %v2745_v34, %v2749_v55  ;;  %v3957_v32 = vadd.f32 %v2758_v45, %v2750_v44  ;;  %v3959_v63 = vadd.f32 %v2760_v3, %v2752_v2 }
 0xba6   :  { %v3953_v58 = vadd.f32 %v2759_v53, %v2751_v4  ;;  %v3955_v31 = vadd.f32 %v2761_v56, %v2753_v5  ;;  %v3122_v4 = vmul.f32 1.0062624, %v3957_v32  ;;  %v3124_v5 = vmul.f32 1.0062624, %v3959_v63 }
 0xba8   :  { %2816 = vmatprep.subr.mxu0 %v3953_v58  ;;  %2905 = vmatprep.subr.mxu1 %v3955_v31 }
 0xba9   :  { %2817 = vmatpush1.msra.mxu0 %v3957_v32  ;;  %2906 = vmatpush1.msra.mxu1 %v3959_v63 }
 0xbaa   :  { %3255 = vmatmul.mubr.msk.f32.vlgmr.msra.gmra.mxu0 %vm98_vm0, %v3757_v7  ;;  %3259 = vmatmul.mubr.msk.f32.vlgmr.msra.gmra.mxu1 %vm98_vm0, %v3757_v7 }
 0xbab   :  { %2856 = vmatprep.mubr.f32.mxu0 %v3325_v0  ;;  %2945 = vmatprep.mubr.f32.mxu1 %v3325_v0 }
 0xbae   :  { %3256 = vmatmul.mubr.msk.f32.gmra.mxu0 %vm98_vm0, %v3768_v14  ;;  %3260 = vmatmul.mubr.msk.f32.gmra.mxu1 %vm98_vm0, %v3768_v14 }
 0xbaf   :  { %2862 = vmatprep.mubr.f32.mxu0 %v3325_v0  ;;  %2951 = vmatprep.mubr.f32.mxu1 %v3325_v0 }
 0xbb2   :  { %3257 = vmatmul.mubr.msk.f32.gmra.mxu0 %vm98_vm0, %v3779_v35  ;;  %3261 = vmatmul.mubr.msk.f32.gmra.mxu1 %vm98_vm0, %v3779_v35 }
 0xbb3   :  { %2868 = vmatprep.mubr.f32.mxu0 %v3325_v0  ;;  %2957 = vmatprep.mubr.f32.mxu1 %v3325_v0 }
 0xbb6   :  { %3258 = vmatmul.mubr.msk.f32.gmra.mxu0 %vm98_vm0, %v3790_v36  ;;  %3262 = vmatmul.mubr.msk.f32.gmra.mxu1 %vm98_vm0, %v3790_v36 }
 0xbb7   :  { %3044 = vmatprep.mubr.f32.mxu0 %v3325_v0  ;;  %3115 = vmatprep.mubr.f32.mxu1 %v3325_v0 }
 0xc6a   :  { %v2852_v7 = vpop.f32.mrf.mxu0  ;;  %v2941_v14 = vpop.f32.mrf.mxu1 }
 0xc6b   :  { %v2853_v49 = vadd.f32 %v2852_v7, %v2769_v59  ;;  %v2942_v50 = vadd.f32 %v2941_v14, %v2769_v59 }
 0xc6c   :  { %v2854_v29 = vpop.f32.mrf.mxu0  ;;  %v2943_v30 = vpop.f32.mrf.mxu1 }
 0xc6d   :  { %v2855_v46 = vadd.f32 %v2854_v29, %v2769_v59  ;;  %v2944_v47 = vadd.f32 %v2943_v30, %v2769_v59  ;;  %v2964_v55 = vmax.f32 %v2853_v49, 0.0  ;;  %v2966_v56 = vmax.f32 %v2942_v50, 0.0 }
 0xc6e   :  { %v2858_v1 = vpop.f32.mrf.mxu0  ;;  %v2947_v35 = vpop.f32.mrf.mxu1 }
 0xc6f   :  { %v2859_v60 = vadd.f32 %v2858_v1, %v2774_v25  ;;  %v2948_v39 = vadd.f32 %v2947_v35, %v2774_v25  ;;  %v2965_v53 = vmax.f32 %v2855_v46, 0.0  ;;  %v2967_v54 = vmax.f32 %v2944_v47, 0.0 }
 0xc70   :  { %v2860_v6 = vpop.f32.mrf.mxu0  ;;  %v2949_v9 = vpop.f32.mrf.mxu1 }
 0xc71   :  { %v2861_v15 = vadd.f32 %v2860_v6, %v2774_v25  ;;  %v2950_v11 = vadd.f32 %v2949_v9, %v2774_v25  ;;  %v2968_v33 = vmax.f32 %v2859_v60, 0.0  ;;  %v2970_v34 = vmax.f32 %v2948_v39, 0.0 }
 0xc72   :  { %v2864_v42 = vpop.f32.mrf.mxu0  ;;  %v2953_v43 = vpop.f32.mrf.mxu1  ;;  %v3125_v6 = vmul.f32 1.0062624, %v3955_v31 }
 0xc73   :  { %v2865_v26 = vadd.f32 %v2864_v42, %v2779_v20  ;;  %v2954_v27 = vadd.f32 %v2953_v43, %v2779_v20  ;;  %v2969_v37 = vmax.f32 %v2861_v15, 0.0  ;;  %v2971_v38 = vmax.f32 %v2950_v11, 0.0 }
 0xc74   :  { %v2866_v12 = vpop.f32.mrf.mxu0  ;;  %v2955_v19 = vpop.f32.mrf.mxu1 }
 0xc75   :  { %v2867_v17 = vadd.f32 %v2866_v12, %v2779_v20  ;;  %v2956_v22 = vadd.f32 %v2955_v19, %v2779_v20  ;;  %v2972_v51 = vmax.f32 %v2865_v26, 0.0  ;;  %v2974_v52 = vmax.f32 %v2954_v27, 0.0 }
 0xc76   :  { %v2870_v21 = vpop.f32.mrf.mxu0  ;;  %v2959_v36 = vpop.f32.mrf.mxu1 }
 0xc77   :  { %v2871_v61 = vadd.f32 %v2870_v21, %v2784_v18  ;;  %v2960_v62 = vadd.f32 %v2959_v36, %v2784_v18  ;;  %v2973_v40 = vmax.f32 %v2867_v17, 0.0  ;;  %v2975_v48 = vmax.f32 %v2956_v22, 0.0 }
 0xc78   :  { %v2872_v16 = vpop.f32.mrf.mxu0  ;;  %v2961_v0 = vpop.f32.mrf.mxu1 }
 0xc79   :  { %v2873_v23 = vadd.f32 %v2872_v16, %v2784_v18  ;;  %v2962_v24 = vadd.f32 %v2961_v0, %v2784_v18  ;;  %v2976_v8 = vmax.f32 %v2871_v61, 0.0  ;;  %v2978_v10 = vmax.f32 %v2960_v62, 0.0 }
 0xc7b   :  { %v2977_v13 = vmax.f32 %v2873_v23, 0.0  ;;  %v2979_v28 = vmax.f32 %v2962_v24, 0.0 }
 0xc7d   :  { %3004 = vmatprep.subr.mxu0 %v2977_v13  ;;  %3075 = vmatprep.subr.mxu1 %v2979_v28 }
 0xc7e   :  { %3005 = vmatpush1.msra.mxu0 %v2976_v8  ;;  %3076 = vmatpush1.msra.mxu1 %v2978_v10 }
 0xc7f   :  { %3006 = vmatprep.subr.mxu0 %v2973_v40  ;;  %3077 = vmatprep.subr.mxu1 %v2975_v48 }
 0xc80   :  { %3007 = vmatpush1.msra.mxu0 %v2972_v51  ;;  %3078 = vmatpush1.msra.mxu1 %v2974_v52 }
 0xc81   :  { %3008 = vmatprep.subr.mxu0 %v2969_v37  ;;  %3079 = vmatprep.subr.mxu1 %v2971_v38 }
 0xc82   :  { %3009 = vmatpush1.msra.mxu0 %v2968_v33  ;;  %3080 = vmatpush1.msra.mxu1 %v2970_v34 }
 0xc83   :  { %3010 = vmatprep.subr.mxu0 %v2965_v53  ;;  %3081 = vmatprep.subr.mxu1 %v2967_v54 }
 0xc84   :  { %3011 = vmatpush1.msra.mxu0 %v2964_v55  ;;  %3082 = vmatpush1.msra.mxu1 %v2966_v56 }
 0xc85   :  { %3263 = vmatmul.mubr.msk.f32.vlgmr.msra.gmra.mxu0 %vm310_vm1, %v3863_v57  ;;  %3264 = vmatmul.mubr.msk.f32.vlgmr.msra.gmra.mxu1 %vm310_vm1, %v3863_v57  ;;  %v3123_v57 = vmul.f32 1.0062624, %v3953_v58 }
 0xd45   :  { %v3046_v44 = vpop.f32.mrf.mxu0  ;;  %v3117_v45 = vpop.f32.mrf.mxu1 }
 0xd46   :  { %v3047_v2 = vadd.f32 %v3046_v44, %v3534_v41  ;;  %v3118_v3 = vadd.f32 %v3117_v45, %v3534_v41 }
 0xd47   :  { %v3048_v7 = vpop.f32.mrf.mxu0  ;;  %v3119_v14 = vpop.f32.mrf.mxu1 }
 0xd48   :  { %v3126_v29 = vmul.f32 12.518652, %v3047_v2  ;;  %v3128_v30 = vmul.f32 12.518652, %v3118_v3  ;;  %v3049_v1 = vadd.f32 %v3048_v7, %v3534_v41  ;;  %v3120_v35 = vadd.f32 %v3119_v14, %v3534_v41 }
 0xd4a   :  { %v3130_v9 = vsub.f32 %v3122_v4, %v3126_v29  ;;  %v3132_v42 = vsub.f32 %v3124_v5, %v3128_v30  ;;  %v3127_v43 = vmul.f32 12.518652, %v3049_v1  ;;  %v3129_v18 = vmul.f32 12.518652, %v3120_v35 }
 0xd4c   :  { %v3265_v32 = vclamps-f32 %v3130_v9, 1.0  ;;  %v3267_v63 = vclamps-f32 %v3132_v42, 1.0  ;;  %v3131_v12 = vsub.f32 %v3123_v57, %v3127_v43  ;;  %v3133_v19 = vsub.f32 %v3125_v6, %v3129_v18 }
 0xd4e   :  { %3142 = vst [vmem:[#allocation5] sm:$0xff] %v3265_v32  ;;  %3144 = vst [vmem:[#allocation5 + $0x10] sm:$0xff] %v3267_v63  ;;  %v3266_v20 = vclamps-f32 %v3131_v12, 1.0  ;;  %v3268_v21 = vclamps-f32 %v3133_v19, 1.0 }
 0xd50   :  { %3143 = vst [vmem:[#allocation5 + $0x8] sm:$0xff] %v3266_v20  ;;  %3145 = vst [vmem:[#allocation5 + $0x18] sm:$0xff] %v3268_v21 }
 0xd51   :  { %3311 = shalt.err (!%p3308_p9)
}
 0xd52   :  { %3155 = dma.vmem_to_hbm [thread:$0]  %s3153_s8, 512, %s4010_s6, [#allocation4]  }
 0xd53   :  { %3322 = dma.done.wait [#allocation4], 512  }
 0xd54   :  { %3323 = vsyncadd [#allocation4], 4294966784 }
 0xd55   :  { %3159 = vsyncpa [#allocation3], 1 }
 0xd56   :  { %3160 = vsyncpa [#allocation4], 1 }

</bundles_post_ra>
